<compile_context>
chip_gen: v5e
topology: v5e:2x2
jax: 0.10.0
libtpu: 0.0.40
codegen_flags: <defaults>
</compile_context>

<pallas_src>
import functools
import math

import jax
import jax.numpy as jnp
from jax.experimental import pallas as pl
from jax.experimental.pallas import tpu as pltpu


# ----------------------------------------------------------------------------
# tiling helpers
# ----------------------------------------------------------------------------
def _pick_tile(dim, target, granule):
    """Largest multiple of `granule` <= target that evenly divides dim.

    Falls back to the full dimension (always a legal block size) when no such
    tile exists, so we never emit a block that violates the (8, 128) rule.
    """
    if dim <= target:
        return dim
    t = (target // granule) * granule
    while t >= granule:
        if dim % t == 0:
            return t
        t -= granule
    return dim


def _pick_channel_tile(C, H, W, budget_bytes=1 << 20):
    """Channel tile so one f32 (H, W, tc) block stays within ~budget_bytes.

    Keeps the dwconv kernel (block + ~4 full-size f32 temporaries, double
    buffered in/out) well inside v5e's 16 MiB scoped default and v7x's 64 MiB
    physical VMEM at real PVT feature-map sizes.
    """
    if C % 128 != 0:
        return C                      # full dim is always a legal block
    max_tc = (budget_bytes // max(1, H * W * 4)) // 128 * 128
    max_tc = max(128, max_tc)
    t = (min(C, max_tc) // 128) * 128
    while t >= 128:
        if C % t == 0:
            return t
        t -= 128
    return C


# ----------------------------------------------------------------------------
# Kernel 1: tiled, K-accumulating linear  y = x @ W + b  (+ optional fused ReLU)
# ----------------------------------------------------------------------------
def _matmul_bias_kernel_out_acc(x_ref, w_ref, b_ref, o_ref, *, apply_relu):
    """f32 output: accumulate directly into the resident output block."""
    @pl.when(pl.program_id(2) == 0)
    def _():
        o_ref[...] = jnp.broadcast_to(b_ref[...].astype(jnp.float32), o_ref.shape)

    # No operand upcast: MXU consumes native dtype, accumulates in f32.
    # TODO(synk): optional bf16 cast of operands for 3-6x MXU throughput.
    o_ref[...] += jnp.dot(x_ref[...], w_ref[...],
                          preferred_element_type=jnp.float32)

    if apply_relu:
        @pl.when(pl.program_id(2) == pl.num_programs(2) - 1)
        def _():
            o_ref[...] = jnp.maximum(o_ref[...], 0.0)


def _matmul_bias_kernel_scratch(x_ref, w_ref, b_ref, o_ref, acc_ref, *, apply_relu):
    """Generic dtype output: f32 VMEM scratch accumulator, cast on finalize."""
    @pl.when(pl.program_id(2) == 0)
    def _():
        acc_ref[...] = jnp.zeros_like(acc_ref)

    acc_ref[...] += jnp.dot(x_ref[...], w_ref[...],
                            preferred_element_type=jnp.float32)

    @pl.when(pl.program_id(2) == pl.num_programs(2) - 1)
    def _():
        y = acc_ref[...] + b_ref[...].astype(jnp.float32)
        if apply_relu:
            y = jnp.maximum(y, 0.0)
        o_ref[...] = y.astype(o_ref.dtype)


def linear_tiled(x2d, w, b, *, apply_relu=False, tm=512, tn=512, tk=512):
    """x2d: (M, K), w: (K, Nout), b: (1, Nout) -> (M, Nout)."""
    M, K = x2d.shape
    Kw, Nout = w.shape
    assert K == Kw
    tm = _pick_tile(M, tm, 8)       # sublane dim of x / out blocks
    tn = _pick_tile(Nout, tn, 128)  # lane dim of w / out blocks
    tk = _pick_tile(K, tk, 128)     # lane dim of x block, sublane dim of w block
    grid = (M // tm, Nout // tn, K // tk)

    f32_out = x2d.dtype == jnp.float32
    if f32_out:
        kernel = functools.partial(_matmul_bias_kernel_out_acc, apply_relu=apply_relu)
        scratch_shapes = []
    else:
        kernel = functools.partial(_matmul_bias_kernel_scratch, apply_relu=apply_relu)
        scratch_shapes = [pltpu.VMEM((tm, tn), jnp.float32)]

    return pl.pallas_call(
        kernel,
        out_shape=jax.ShapeDtypeStruct((M, Nout), x2d.dtype),
        grid_spec=pltpu.PrefetchScalarGridSpec(
            num_scalar_prefetch=0,
            grid=grid,
            in_specs=[
                pl.BlockSpec((tm, tk), lambda i, j, k: (i, k)),
                pl.BlockSpec((tk, tn), lambda i, j, k: (k, j)),
                pl.BlockSpec((1, tn), lambda i, j, k: (0, j)),
            ],
            out_specs=pl.BlockSpec((tm, tn), lambda i, j, k: (i, j)),
            scratch_shapes=scratch_shapes,
        ),
        compiler_params=pltpu.CompilerParams(
            dimension_semantics=("parallel", "parallel", "arbitrary"),
            vmem_limit_bytes=48 * 1024 * 1024),
    )(x2d, w, b)


# ----------------------------------------------------------------------------
# Kernel 2: depthwise 3x3 conv (stride 1, zero-pad 1) + fused exact GELU, NHWC
# ----------------------------------------------------------------------------
def _dwconv3x3_gelu_kernel(x_ref, w_ref, b_ref, o_ref):
    x = x_ref[...].astype(jnp.float32)                 # (H, W, Ct), channels on lanes
    H, W, Ct = x.shape
    wts = w_ref[...].astype(jnp.float32)               # (3, 3, Ct)
    bias = b_ref[...].astype(jnp.float32)              # (1, 1, Ct)

    # Zero-pad rows (vreg-indexed dim -> cheap) and columns (sublane dim).
    zrow = jnp.zeros((1, W, Ct), jnp.float32)
    xh = jnp.concatenate([zrow, x, zrow], axis=0)      # (H+2, W, Ct)
    zcol = jnp.zeros((H + 2, 1, Ct), jnp.float32)
    xp = jnp.concatenate([zcol, xh, zcol], axis=1)     # (H+2, W+2, Ct)

    acc = jnp.broadcast_to(bias, (H, W, Ct))           # bias hoisted once
    for dh in range(3):                                # fully unrolled 9 taps
        for dw in range(3):
            acc = acc + xp[dh:dh + H, dw:dw + W, :] * wts[dh, dw]

    # Fused exact (erf) GELU — matches nn.GELU(); EUP slot is otherwise idle.
    # Dropout(p=0.0) is the identity.
    out = 0.5 * acc * (1.0 + jax.lax.erf(acc * (1.0 / math.sqrt(2.0))))
    o_ref[...] = out.astype(o_ref.dtype)


def dwconv3x3_gelu(x_nhwc, w, b):
    """x_nhwc: (B, H, W, C); w: (3, 3, C); b: (1, 1, C) -> GELU(dwconv(x)+b)."""
    B, H, W, C = x_nhwc.shape
    tc = _pick_channel_tile(C, H, W)
    # TODO(synk): add an H-band grid axis (1-row halo) so v7x's 2nd TensorCore
    # gets work when B * (C // tc) < 2; channel tiling already bounds VMEM.
    img_spec = pl.BlockSpec((None, H, W, tc), lambda bi, ci: (bi, 0, 0, ci))
    return pl.pallas_call(
        _dwconv3x3_gelu_kernel,
        out_shape=jax.ShapeDtypeStruct((B, H, W, C), x_nhwc.dtype),
        grid_spec=pltpu.PrefetchScalarGridSpec(
            num_scalar_prefetch=0,
            grid=(B, C // tc),
            in_specs=[
                img_spec,
                pl.BlockSpec((3, 3, tc), lambda bi, ci: (0, 0, ci)),
                pl.BlockSpec((1, 1, tc), lambda bi, ci: (0, 0, ci)),
            ],
            out_specs=img_spec,
        ),
        compiler_params=pltpu.CompilerParams(
            dimension_semantics=("parallel", "parallel"),
            vmem_limit_bytes=48 * 1024 * 1024),
    )(x_nhwc, w, b)


# ----------------------------------------------------------------------------
# Full Mlp forward
# ----------------------------------------------------------------------------
def mlp_forward(x, params, H, W, linear=False):
    """x: (B, N, C) with N = H*W. Reproduces Mlp.forward(x, H, W) (drop=0.0)."""
    B, N, C = x.shape
    hidden = params["fc1_w"].shape[1]
    out_features = params["fc2_w"].shape[1]

    # fc1 (+ fused ReLU when linear=True)
    h = linear_tiled(x.reshape(B * N, C), params["fc1_w"], params["fc1_b"],
                     apply_relu=linear)                              # (B*N, hidden)

    # (B, N, hidden) row-major == (B, H, W, hidden) NHWC: pure reshape, no transpose.
    h_img = h.reshape(B, H, W, hidden)
    # depthwise 3x3 + bias + exact GELU fused in one kernel (dropout(p=0) = id)
    a = dwconv3x3_gelu(h_img, params["dw_w"], params["dw_b"])        # (B, H, W, hidden)

    y = linear_tiled(a.reshape(B * N, hidden), params["fc2_w"], params["fc2_b"])
    return y.reshape(B, N, out_features)


# ----------------------------------------------------------------------------
# Pure-JAX reference
# ----------------------------------------------------------------------------
def mlp_ref(x, params, H, W, linear=False):
    B, N, C = x.shape
    hid = params["fc1_w"].shape[1]
    hp = jax.lax.Precision.HIGHEST
    h = jnp.einsum("bnc,ch->bnh", x, params["fc1_w"], precision=hp) + params["fc1_b"]
    if linear:
        h = jnp.maximum(h, 0.0)
    himg = h.reshape(B, H, W, hid)
    conv = jax.lax.conv_general_dilated(
        himg, params["dw_w"].reshape(3, 3, 1, hid),
        window_strides=(1, 1), padding="SAME",
        dimension_numbers=("NHWC", "HWIO", "NHWC"),
        feature_group_count=hid, precision=hp,
    ) + params["dw_b"].reshape(1, 1, 1, hid)
    a = jax.nn.gelu(conv, approximate=False).reshape(B, N, hid)
    return jnp.einsum("bnh,ho->bno", a, params["fc2_w"], precision=hp) + params["fc2_b"]


if __name__ == "__main__":
    B, H, W = 2, 8, 8
    N = H * W
    in_features = 32
    hidden_features = 128
    out_features = in_features

    key = jax.random.PRNGKey(0)
    k1, k2, k3, kx = jax.random.split(key, 4)

    # trunc_normal_(std=0.02) approximated by normal*0.02; linear/conv biases are 0.
    # Conv2d init: normal(0, sqrt(2/fan_out)) with fan_out = 3*3*C/groups = 9.
    # TODO(synk): exact truncated-normal init not reproduced (synthetic weights).
    params = {
        "fc1_w": jax.random.normal(k1, (in_features, hidden_features), jnp.float32) * 0.02,
        "fc1_b": jnp.zeros((1, hidden_features), jnp.float32),
        "dw_w": jax.random.normal(k2, (3, 3, hidden_features), jnp.float32)
                * math.sqrt(2.0 / 9.0),
        "dw_b": jnp.zeros((1, 1, hidden_features), jnp.float32),
        "fc2_w": jax.random.normal(k3, (hidden_features, out_features), jnp.float32) * 0.02,
        "fc2_b": jnp.zeros((1, out_features), jnp.float32),
    }

    x = jax.random.normal(kx, (B, N, in_features), jnp.float32)

    fwd = jax.jit(mlp_forward, static_argnums=(2, 3, 4))

    # linear=False path
    out = jax.block_until_ready(fwd(x, params, H, W, False))
    ref = mlp_ref(x, params, H, W, False)
    assert out.shape == (B, N, out_features)
    assert jnp.allclose(out, ref, atol=1e-4, rtol=1e-4), "mismatch vs reference (linear=False)"

    # linear=True path (fused ReLU after fc1)
    out_l = jax.block_until_ready(fwd(x, params, H, W, True))
    ref_l = mlp_ref(x, params, H, W, True)
    assert jnp.allclose(out_l, ref_l, atol=1e-4, rtol=1e-4), "mismatch vs reference (linear=True)"

    print("KERNEL_OK")
</pallas_src>

<mosaic_0001>
module attributes {stable_mosaic.version = 11 : i64} {
  func.func @_matmul_bias_kernel_out_acc(%arg0: i32, %arg1: i32, %arg2: i32, %arg3: memref<128x32xf32, #tpu.memory_space<vmem>>, %arg4: memref<32x128xf32, #tpu.memory_space<vmem>>, %arg5: memref<1x128xf32, #tpu.memory_space<vmem>>, %arg6: memref<128x128xf32, #tpu.memory_space<vmem>>) attributes {dimension_semantics = [#tpu.dimension_semantics<parallel>, #tpu.dimension_semantics<parallel>, #tpu.dimension_semantics<arbitrary>], iteration_bounds = array<i64: 1, 1, 1>, scalar_prefetch = 0 : i64, scratch_operands = 0 : i64, tpu.core_type = #tpu.core_type<tc>, window_params = [{transform_indices = @transform_0, window_bounds = array<i64: 128, 32>}, {transform_indices = @transform_1, window_bounds = array<i64: 32, 128>}, {transform_indices = @transform_2, window_bounds = array<i64: 1, 128>}, {transform_indices = @transform_3, window_bounds = array<i64: 128, 128>}]} {
    %c0_i32 = arith.constant 0 : i32
    %0 = arith.cmpi eq, %arg2, %c0_i32 : i32
    %1 = arith.extui %0 : i1 to i32
    %c0_i32_0 = arith.constant 0 : i32
    %2 = arith.cmpi ne, %1, %c0_i32_0 : i32
    scf.if %2 {
      %c0_8 = arith.constant 0 : index
      %c0_9 = arith.constant 0 : index
      %9 = vector.load %arg5[%c0_8, %c0_9] : memref<1x128xf32, #tpu.memory_space<vmem>>, vector<1x128xf32>
      %10 = vector.shape_cast %9 : vector<1x128xf32> to vector<1x128xf32>
      %11 = vector.broadcast %10 : vector<1x128xf32> to vector<128x128xf32>
      %c0_10 = arith.constant 0 : index
      %c0_11 = arith.constant 0 : index
      %12 = vector.load %arg6[%c0_10, %c0_11] : memref<128x128xf32, #tpu.memory_space<vmem>>, vector<128x128xf32>
      tpu.vector_store %arg6[%c0_10, %c0_11], %11 {strides = array<i32>} : memref<128x128xf32, #tpu.memory_space<vmem>>, vector<128x128xf32>,
    } else {
    }
    %c0 = arith.constant 0 : index
    %c0_1 = arith.constant 0 : index
    %3 = vector.load %arg6[%c0, %c0_1] : memref<128x128xf32, #tpu.memory_space<vmem>>, vector<128x128xf32>
    %c0_2 = arith.constant 0 : index
    %c0_3 = arith.constant 0 : index
    %4 = vector.load %arg3[%c0_2, %c0_3] : memref<128x32xf32, #tpu.memory_space<vmem>>, vector<128x32xf32>
    %c0_4 = arith.constant 0 : index
    %c0_5 = arith.constant 0 : index
    %5 = vector.load %arg4[%c0_4, %c0_5] : memref<32x128xf32, #tpu.memory_space<vmem>>, vector<32x128xf32>
    %cst = arith.constant dense<0.000000e+00> : vector<128x128xf32>
    %6 = tpu.matmul %4, %5, %cst {dimension_numbers = #tpu.dot_dimension_numbers<[1], [0], [0], [1], [0, 0, 1, 1], [], []>} : vector<128x32xf32>, vector<32x128xf32>, vector<128x128xf32> -> vector<128x128xf32>
    %7 = arith.addf %3, %6 : vector<128x128xf32>
    %c0_6 = arith.constant 0 : index
    %c0_7 = arith.constant 0 : index
    %8 = vector.load %arg6[%c0_6, %c0_7] : memref<128x128xf32, #tpu.memory_space<vmem>>, vector<128x128xf32>
    tpu.vector_store %arg6[%c0_6, %c0_7], %7 {strides = array<i32>} : memref<128x128xf32, #tpu.memory_space<vmem>>, vector<128x128xf32>,
    return
  }
  func.func @transform_0(%arg0: i32, %arg1: i32, %arg2: i32) -> (i32, i32) {
    %c0_i32 = arith.constant 0 : i32
    return %arg0, %arg2 : i32, i32
  }
  func.func @transform_1(%arg0: i32, %arg1: i32, %arg2: i32) -> (i32, i32) {
    %c0_i32 = arith.constant 0 : i32
    return %arg2, %arg1 : i32, i32
  }
  func.func @transform_2(%arg0: i32, %arg1: i32, %arg2: i32) -> (i32, i32) {
    %c0_i32 = arith.constant 0 : i32
    %c0_i32_0 = arith.constant 0 : i32
    return %c0_i32, %arg1 : i32, i32
  }
  func.func @transform_3(%arg0: i32, %arg1: i32, %arg2: i32) -> (i32, i32) {
    %c0_i32 = arith.constant 0 : i32
    return %arg0, %arg1 : i32, i32
  }
}

module attributes {stable_mosaic.version = 11 : i64} {
  func.func @_dwconv3x3_gelu_kernel(%arg0: i32, %arg1: i32, %arg2: memref<1x8x8x128xf32, #tpu.memory_space<vmem>>, %arg3: memref<3x3x128xf32, #tpu.memory_space<vmem>>, %arg4: memref<1x1x128xf32, #tpu.memory_space<vmem>>, %arg5: memref<1x8x8x128xf32, #tpu.memory_space<vmem>>) attributes {dimension_semantics = [#tpu.dimension_semantics<parallel>, #tpu.dimension_semantics<parallel>], iteration_bounds = array<i64: 2, 1>, scalar_prefetch = 0 : i64, scratch_operands = 0 : i64, tpu.core_type = #tpu.core_type<tc>, window_params = [{transform_indices = @transform_0, window_bounds = array<i64: 1, 8, 8, 128>}, {transform_indices = @transform_1, window_bounds = array<i64: 3, 3, 128>}, {transform_indices = @transform_2, window_bounds = array<i64: 1, 1, 128>}, {transform_indices = @transform_3, window_bounds = array<i64: 1, 8, 8, 128>}]} {
    %c0 = arith.constant 0 : index
    %c0_0 = arith.constant 0 : index
    %c0_1 = arith.constant 0 : index
    %c0_2 = arith.constant 0 : index
    %0 = vector.load %arg2[%c0, %c0_0, %c0_1, %c0_2] : memref<1x8x8x128xf32, #tpu.memory_space<vmem>>, vector<1x8x8x128xf32>
    %1 = vector.shape_cast %0 : vector<1x8x8x128xf32> to vector<8x8x128xf32>
    %c0_3 = arith.constant 0 : index
    %c0_4 = arith.constant 0 : index
    %c0_5 = arith.constant 0 : index
    %2 = vector.load %arg3[%c0_3, %c0_4, %c0_5] : memref<3x3x128xf32, #tpu.memory_space<vmem>>, vector<3x3x128xf32>
    %c0_6 = arith.constant 0 : index
    %c0_7 = arith.constant 0 : index
    %c0_8 = arith.constant 0 : index
    %3 = vector.load %arg4[%c0_6, %c0_7, %c0_8] : memref<1x1x128xf32, #tpu.memory_space<vmem>>, vector<1x1x128xf32>
    %cst = arith.constant 0.000000e+00 : f32
    %4 = vector.broadcast %cst : f32 to vector<1x8x128xf32>
    %5 = tpu.concatenate %4, %1, %4 in 0 : vector<1x8x128xf32>, vector<8x8x128xf32>, vector<1x8x128xf32> -> vector<10x8x128xf32>
    %cst_9 = arith.constant 0.000000e+00 : f32
    %6 = vector.broadcast %cst_9 : f32 to vector<10x1x128xf32>
    %7 = tpu.concatenate %6, %5, %6 in 1 : vector<10x1x128xf32>, vector<10x8x128xf32>, vector<10x1x128xf32> -> vector<10x10x128xf32>
    %8 = vector.shape_cast %3 : vector<1x1x128xf32> to vector<1x1x128xf32>
    %9 = vector.broadcast %8 : vector<1x1x128xf32> to vector<8x8x128xf32>
    %10 = vector.extract_strided_slice %7 {offsets = [0, 0, 0], sizes = [8, 8, 128], strides = [1, 1, 1]} : vector<10x10x128xf32> to vector<8x8x128xf32>
    %11 = vector.extract_strided_slice %2 {offsets = [0, 0, 0], sizes = [1, 1, 128], strides = [1, 1, 1]} : vector<3x3x128xf32> to vector<1x1x128xf32>
    %12 = vector.shape_cast %11 : vector<1x1x128xf32> to vector<128xf32>
    %13 = vector.shape_cast %12 : vector<128xf32> to vector<1x1x128xf32>
    %14 = vector.broadcast %13 : vector<1x1x128xf32> to vector<8x8x128xf32>
    %15 = arith.mulf %10, %14 : vector<8x8x128xf32>
    %16 = arith.addf %9, %15 : vector<8x8x128xf32>
    %17 = vector.extract_strided_slice %7 {offsets = [0, 1, 0], sizes = [8, 8, 128], strides = [1, 1, 1]} : vector<10x10x128xf32> to vector<8x8x128xf32>
    %18 = vector.extract_strided_slice %2 {offsets = [0, 1, 0], sizes = [1, 1, 128], strides = [1, 1, 1]} : vector<3x3x128xf32> to vector<1x1x128xf32>
    %19 = vector.shape_cast %18 : vector<1x1x128xf32> to vector<128xf32>
    %20 = vector.shape_cast %19 : vector<128xf32> to vector<1x1x128xf32>
    %21 = vector.broadcast %20 : vector<1x1x128xf32> to vector<8x8x128xf32>
    %22 = arith.mulf %17, %21 : vector<8x8x128xf32>
    %23 = arith.addf %16, %22 : vector<8x8x128xf32>
    %24 = vector.extract_strided_slice %7 {offsets = [0, 2, 0], sizes = [8, 8, 128], strides = [1, 1, 1]} : vector<10x10x128xf32> to vector<8x8x128xf32>
    %25 = vector.extract_strided_slice %2 {offsets = [0, 2, 0], sizes = [1, 1, 128], strides = [1, 1, 1]} : vector<3x3x128xf32> to vector<1x1x128xf32>
    %26 = vector.shape_cast %25 : vector<1x1x128xf32> to vector<128xf32>
    %27 = vector.shape_cast %26 : vector<128xf32> to vector<1x1x128xf32>
    %28 = vector.broadcast %27 : vector<1x1x128xf32> to vector<8x8x128xf32>
    %29 = arith.mulf %24, %28 : vector<8x8x128xf32>
    %30 = arith.addf %23, %29 : vector<8x8x128xf32>
    %31 = vector.extract_strided_slice %7 {offsets = [1, 0, 0], sizes = [8, 8, 128], strides = [1, 1, 1]} : vector<10x10x128xf32> to vector<8x8x128xf32>
    %32 = vector.extract_strided_slice %2 {offsets = [1, 0, 0], sizes = [1, 1, 128], strides = [1, 1, 1]} : vector<3x3x128xf32> to vector<1x1x128xf32>
    %33 = vector.shape_cast %32 : vector<1x1x128xf32> to vector<128xf32>
    %34 = vector.shape_cast %33 : vector<128xf32> to vector<1x1x128xf32>
    %35 = vector.broadcast %34 : vector<1x1x128xf32> to vector<8x8x128xf32>
    %36 = arith.mulf %31, %35 : vector<8x8x128xf32>
    %37 = arith.addf %30, %36 : vector<8x8x128xf32>
    %38 = vector.extract_strided_slice %7 {offsets = [1, 1, 0], sizes = [8, 8, 128], strides = [1, 1, 1]} : vector<10x10x128xf32> to vector<8x8x128xf32>
    %39 = vector.extract_strided_slice %2 {offsets = [1, 1, 0], sizes = [1, 1, 128], strides = [1, 1, 1]} : vector<3x3x128xf32> to vector<1x1x128xf32>
    %40 = vector.shape_cast %39 : vector<1x1x128xf32> to vector<128xf32>
    %41 = vector.shape_cast %40 : vector<128xf32> to vector<1x1x128xf32>
    %42 = vector.broadcast %41 : vector<1x1x128xf32> to vector<8x8x128xf32>
    %43 = arith.mulf %38, %42 : vector<8x8x128xf32>
    %44 = arith.addf %37, %43 : vector<8x8x128xf32>
    %45 = vector.extract_strided_slice %7 {offsets = [1, 2, 0], sizes = [8, 8, 128], strides = [1, 1, 1]} : vector<10x10x128xf32> to vector<8x8x128xf32>
    %46 = vector.extract_strided_slice %2 {offsets = [1, 2, 0], sizes = [1, 1, 128], strides = [1, 1, 1]} : vector<3x3x128xf32> to vector<1x1x128xf32>
    %47 = vector.shape_cast %46 : vector<1x1x128xf32> to vector<128xf32>
    %48 = vector.shape_cast %47 : vector<128xf32> to vector<1x1x128xf32>
    %49 = vector.broadcast %48 : vector<1x1x128xf32> to vector<8x8x128xf32>
    %50 = arith.mulf %45, %49 : vector<8x8x128xf32>
    %51 = arith.addf %44, %50 : vector<8x8x128xf32>
    %52 = vector.extract_strided_slice %7 {offsets = [2, 0, 0], sizes = [8, 8, 128], strides = [1, 1, 1]} : vector<10x10x128xf32> to vector<8x8x128xf32>
    %53 = vector.extract_strided_slice %2 {offsets = [2, 0, 0], sizes = [1, 1, 128], strides = [1, 1, 1]} : vector<3x3x128xf32> to vector<1x1x128xf32>
    %54 = vector.shape_cast %53 : vector<1x1x128xf32> to vector<128xf32>
    %55 = vector.shape_cast %54 : vector<128xf32> to vector<1x1x128xf32>
    %56 = vector.broadcast %55 : vector<1x1x128xf32> to vector<8x8x128xf32>
    %57 = arith.mulf %52, %56 : vector<8x8x128xf32>
    %58 = arith.addf %51, %57 : vector<8x8x128xf32>
    %59 = vector.extract_strided_slice %7 {offsets = [2, 1, 0], sizes = [8, 8, 128], strides = [1, 1, 1]} : vector<10x10x128xf32> to vector<8x8x128xf32>
    %60 = vector.extract_strided_slice %2 {offsets = [2, 1, 0], sizes = [1, 1, 128], strides = [1, 1, 1]} : vector<3x3x128xf32> to vector<1x1x128xf32>
    %61 = vector.shape_cast %60 : vector<1x1x128xf32> to vector<128xf32>
    %62 = vector.shape_cast %61 : vector<128xf32> to vector<1x1x128xf32>
    %63 = vector.broadcast %62 : vector<1x1x128xf32> to vector<8x8x128xf32>
    %64 = arith.mulf %59, %63 : vector<8x8x128xf32>
    %65 = arith.addf %58, %64 : vector<8x8x128xf32>
    %66 = vector.extract_strided_slice %7 {offsets = [2, 2, 0], sizes = [8, 8, 128], strides = [1, 1, 1]} : vector<10x10x128xf32> to vector<8x8x128xf32>
    %67 = vector.extract_strided_slice %2 {offsets = [2, 2, 0], sizes = [1, 1, 128], strides = [1, 1, 1]} : vector<3x3x128xf32> to vector<1x1x128xf32>
    %68 = vector.shape_cast %67 : vector<1x1x128xf32> to vector<128xf32>
    %69 = vector.shape_cast %68 : vector<128xf32> to vector<1x1x128xf32>
    %70 = vector.broadcast %69 : vector<1x1x128xf32> to vector<8x8x128xf32>
    %71 = arith.mulf %66, %70 : vector<8x8x128xf32>
    %72 = arith.addf %65, %71 : vector<8x8x128xf32>
    %cst_10 = arith.constant 5.000000e-01 : f32
    %73 = vector.broadcast %cst_10 : f32 to vector<8x8x128xf32>
    %74 = arith.mulf %73, %72 : vector<8x8x128xf32>
    %cst_11 = arith.constant 0.707106769 : f32
    %75 = vector.broadcast %cst_11 : f32 to vector<8x8x128xf32>
    %76 = arith.mulf %72, %75 : vector<8x8x128xf32>
    %77 = math.erf %76 : vector<8x8x128xf32>
    %cst_12 = arith.constant 1.000000e+00 : f32
    %78 = vector.broadcast %cst_12 : f32 to vector<8x8x128xf32>
    %79 = arith.addf %78, %77 : vector<8x8x128xf32>
    %80 = arith.mulf %74, %79 : vector<8x8x128xf32>
    %c0_13 = arith.constant 0 : index
    %c0_14 = arith.constant 0 : index
    %c0_15 = arith.constant 0 : index
    %c0_16 = arith.constant 0 : index
    %81 = vector.load %arg5[%c0_13, %c0_14, %c0_15, %c0_16] : memref<1x8x8x128xf32, #tpu.memory_space<vmem>>, vector<1x8x8x128xf32>
    %82 = vector.shape_cast %81 : vector<1x8x8x128xf32> to vector<8x8x128xf32>
    %83 = vector.shape_cast %80 : vector<8x8x128xf32> to vector<1x8x8x128xf32>
    tpu.vector_store %arg5[%c0_13, %c0_14, %c0_15, %c0_16], %83 {strides = array<i32>} : memref<1x8x8x128xf32, #tpu.memory_space<vmem>>, vector<1x8x8x128xf32>,
    return
  }
  func.func @transform_0(%arg0: i32, %arg1: i32) -> (i32, i32, i32, i32) {
    %c0_i32 = arith.constant 0 : i32
    %c0_i32_0 = arith.constant 0 : i32
    %c0_i32_1 = arith.constant 0 : i32
    return %arg0, %c0_i32, %c0_i32_0, %arg1 : i32, i32, i32, i32
  }
  func.func @transform_1(%arg0: i32, %arg1: i32) -> (i32, i32, i32) {
    %c0_i32 = arith.constant 0 : i32
    %c0_i32_0 = arith.constant 0 : i32
    %c0_i32_1 = arith.constant 0 : i32
    return %c0_i32, %c0_i32_0, %arg1 : i32, i32, i32
  }
  func.func @transform_2(%arg0: i32, %arg1: i32) -> (i32, i32, i32) {
    %c0_i32 = arith.constant 0 : i32
    %c0_i32_0 = arith.constant 0 : i32
    %c0_i32_1 = arith.constant 0 : i32
    return %c0_i32, %c0_i32_0, %arg1 : i32, i32, i32
  }
  func.func @transform_3(%arg0: i32, %arg1: i32) -> (i32, i32, i32, i32) {
    %c0_i32 = arith.constant 0 : i32
    %c0_i32_0 = arith.constant 0 : i32
    %c0_i32_1 = arith.constant 0 : i32
    return %arg0, %c0_i32, %c0_i32_0, %arg1 : i32, i32, i32, i32
  }
}

module attributes {stable_mosaic.version = 11 : i64} {
  func.func @_matmul_bias_kernel_out_acc(%arg0: i32, %arg1: i32, %arg2: i32, %arg3: memref<128x128xf32, #tpu.memory_space<vmem>>, %arg4: memref<128x32xf32, #tpu.memory_space<vmem>>, %arg5: memref<1x32xf32, #tpu.memory_space<vmem>>, %arg6: memref<128x32xf32, #tpu.memory_space<vmem>>) attributes {dimension_semantics = [#tpu.dimension_semantics<parallel>, #tpu.dimension_semantics<parallel>, #tpu.dimension_semantics<arbitrary>], iteration_bounds = array<i64: 1, 1, 1>, scalar_prefetch = 0 : i64, scratch_operands = 0 : i64, tpu.core_type = #tpu.core_type<tc>, window_params = [{transform_indices = @transform_0, window_bounds = array<i64: 128, 128>}, {transform_indices = @transform_1, window_bounds = array<i64: 128, 32>}, {transform_indices = @transform_2, window_bounds = array<i64: 1, 32>}, {transform_indices = @transform_3, window_bounds = array<i64: 128, 32>}]} {
    %c0_i32 = arith.constant 0 : i32
    %0 = arith.cmpi eq, %arg2, %c0_i32 : i32
    %1 = arith.extui %0 : i1 to i32
    %c0_i32_0 = arith.constant 0 : i32
    %2 = arith.cmpi ne, %1, %c0_i32_0 : i32
    scf.if %2 {
      %c0_8 = arith.constant 0 : index
      %c0_9 = arith.constant 0 : index
      %9 = vector.load %arg5[%c0_8, %c0_9] : memref<1x32xf32, #tpu.memory_space<vmem>>, vector<1x32xf32>
      %10 = vector.shape_cast %9 : vector<1x32xf32> to vector<1x32xf32>
      %11 = vector.broadcast %10 : vector<1x32xf32> to vector<128x32xf32>
      %c0_10 = arith.constant 0 : index
      %c0_11 = arith.constant 0 : index
      %12 = vector.load %arg6[%c0_10, %c0_11] : memref<128x32xf32, #tpu.memory_space<vmem>>, vector<128x32xf32>
      tpu.vector_store %arg6[%c0_10, %c0_11], %11 {strides = array<i32>} : memref<128x32xf32, #tpu.memory_space<vmem>>, vector<128x32xf32>,
    } else {
    }
    %c0 = arith.constant 0 : index
    %c0_1 = arith.constant 0 : index
    %3 = vector.load %arg6[%c0, %c0_1] : memref<128x32xf32, #tpu.memory_space<vmem>>, vector<128x32xf32>
    %c0_2 = arith.constant 0 : index
    %c0_3 = arith.constant 0 : index
    %4 = vector.load %arg3[%c0_2, %c0_3] : memref<128x128xf32, #tpu.memory_space<vmem>>, vector<128x128xf32>
    %c0_4 = arith.constant 0 : index
    %c0_5 = arith.constant 0 : index
    %5 = vector.load %arg4[%c0_4, %c0_5] : memref<128x32xf32, #tpu.memory_space<vmem>>, vector<128x32xf32>
    %cst = arith.constant dense<0.000000e+00> : vector<128x32xf32>
    %6 = tpu.matmul %4, %5, %cst {dimension_numbers = #tpu.dot_dimension_numbers<[1], [0], [0], [1], [0, 0, 1, 1], [], []>} : vector<128x128xf32>, vector<128x32xf32>, vector<128x32xf32> -> vector<128x32xf32>
    %7 = arith.addf %3, %6 : vector<128x32xf32>
    %c0_6 = arith.constant 0 : index
    %c0_7 = arith.constant 0 : index
    %8 = vector.load %arg6[%c0_6, %c0_7] : memref<128x32xf32, #tpu.memory_space<vmem>>, vector<128x32xf32>
    tpu.vector_store %arg6[%c0_6, %c0_7], %7 {strides = array<i32>} : memref<128x32xf32, #tpu.memory_space<vmem>>, vector<128x32xf32>,
    return
  }
  func.func @transform_0(%arg0: i32, %arg1: i32, %arg2: i32) -> (i32, i32) {
    %c0_i32 = arith.constant 0 : i32
    return %arg0, %arg2 : i32, i32
  }
  func.func @transform_1(%arg0: i32, %arg1: i32, %arg2: i32) -> (i32, i32) {
    %c0_i32 = arith.constant 0 : i32
    return %arg2, %arg1 : i32, i32
  }
  func.func @transform_2(%arg0: i32, %arg1: i32, %arg2: i32) -> (i32, i32) {
    %c0_i32 = arith.constant 0 : i32
    %c0_i32_0 = arith.constant 0 : i32
    return %c0_i32, %arg1 : i32, i32
  }
  func.func @transform_3(%arg0: i32, %arg1: i32, %arg2: i32) -> (i32, i32) {
    %c0_i32 = arith.constant 0 : i32
    return %arg0, %arg1 : i32, i32
  }
}

</mosaic_0001>

<bundles_post_ra>
// kernel: mlp_forward.4
= control target key start
LH: loop header
LB: loop body
LE: loop exit
PB: predicated region body
PF: predicated region fallthrough
CT: control target
= control target key end

     0   :  { %s1366_s12 = smov 0   ;;  %s1368_s13 = smov 0   ;;  %s2143_s0 = inlined_call_operand.vmem [shape: f32[2,8,8,128], index: 0, kind: input, shape index: {}]   ;;  %s2144_s1 = inlined_call_operand.vmem [shape: f32[3,3,128], index: 1, kind: input, shape index: {}]   ;;  %s2145_s2 = inlined_call_operand.vmem [shape: f32[1,1,128], index: 2, kind: input, shape index: {}]   ;;  %s2146_s3 = inlined_call_operand.vmem [shape: f32[2,8,8,128], index: 3, kind: output, shape index: {}]  }
   0x1   :  { %s1370_s14 = smov 0  }
   0x2 LB: > { %s25_s15 = sadd.s32 1, %s1339_s13  ;;  %p1262_p0 = scmp.ge.s32.totalorder %s1343_s14, 1  ;;  %s1343_s14 = sphi %s1370_s14, %s13_s14   ;;  %s1339_s13 = sphi %s1368_s13, %s2199_s13   ;;  %s1335_s12 = sphi %s1366_s12, %s2198_s12  }
   0x3   : > { %p27_p1 = scmp.ge.s32.totalorder %s25_s15, 2  ;;  %p173_p2 = scmp.lt.s32.totalorder %s1343_s14, 3 }
   0x5   : > { %s2201_s15 = smov (%p27_p1, %s25_s15), 0  ;;  %p174_p3 = pnand %p1262_p0, %p173_p2 }
   0x7   : > { %177 = sbr.rel (%p174_p3) target bundleno = 209 (0xd1), region = 32 }
   0xc   : > { %p210_p4 = scmp.lt.s32.totalorder %s1335_s12, 1  ;;  %v241_v0 = vld [vmem:[%s2144_s1] sm:$0x7]  ;;  %v1345_v1 = vmov 0.0   ;;  %vm272_vm0 = vcmask 1040384   ;;  %vm344_vm1 = vcmask 1046528  }
   0xd   : > { %v254_v2 = vrot.slane %v1345_v1, 7  ;;  %v1390_v3 = vperm.slane %v241_v0, 1  ;;  %v1403_v6 = vperm.slane %v241_v0, 0  ;;  %v1412_v16 = vld [vmem:[%s2144_s1 + $0x4] sm:$0x7]  ;;  %v1414_v17 = vperm.slane %v241_v0, 2 }
   0xe   : > { %s2203_s12 = smov (!%p210_p4, %s1335_s12), 1  ;;  %v1419_v19 = vld [vmem:[%s2145_s2] ss:$0 sm:$0xff]  ;;  %v1434_v32 = vperm.slane %v1412_v16, 0  ;;  %vm418_vm2 = vcmask 1045504  }
   0xf   : > { %s1277_s18 = sshll.u32 %s2203_s12, 6  ;;  %v1393_v4 = vsel %vm272_vm0, 0.0, %v254_v2  ;;  %v1396_v5 = vsel %vm272_vm0, %v254_v2, 0.0 }
  0x10   : > { %2161 = vst [vmem:[#allocation2_spill] sm:$0xff] %v1393_v4  ;;  %s217_s21 = scalar_lea.vmem %s2143_s0, %s1277_s18  ;;  %v312_v7 = vmul.f32 %v1390_v3, %v1393_v4  ;;  %v313_v8 = vmul.f32 %v1390_v3, %v1396_v5  ;;  %v295_v20 = vmul.f32 %v1403_v6, %v1393_v4  ;;  %v1427_v30 = vmul.f32 %v1414_v17, %v1393_v4  ;;  %s2102_s30 = scalar_lea.vmem %s2146_s3, %s1277_s18 }
  0x11   : > { %2162 = vst [vmem:[#allocation3_spill] sm:$0xff] %v1396_v5  ;;  %v233_v9 = vld [vmem:[%s217_s21] sm:$0xff]  ;;  %v234_v10 = vld [vmem:[%s217_s21 + $0x8] sm:$0xff]  ;;  %v235_v11 = vld [vmem:[%s217_s21 + $0x10] sm:$0xff]  ;;  %v1431_v31 = vmul.f32 %v1414_v17, %v1396_v5 }
  0x12   : > { %v236_v12 = vld [vmem:[%s217_s21 + $0x18] sm:$0xff]  ;;  %v237_v13 = vld [vmem:[%s217_s21 + $0x20] sm:$0xff]  ;;  %v238_v14 = vld [vmem:[%s217_s21 + $0x28] sm:$0xff]  ;;  %v255_v18 = vrot.slane %v233_v9, 7  ;;  %v345_v21 = vrot.slane %v312_v7, 1  ;;  %v346_v22 = vrot.slane %v313_v8, 1  ;;  %v1441_v35 = vadd.f32 %v1419_v19, %v295_v20 }
  0x13   : > { %v239_v15 = vld [vmem:[%s217_s21 + $0x30] sm:$0xff]  ;;  %v1423_v23 = vld [vmem:[%s217_s21 + $0x38] sm:$0xff]  ;;  %v256_v24 = vrot.slane %v234_v10, 7  ;;  %v257_v25 = vrot.slane %v235_v11, 7  ;;  %v258_v26 = vrot.slane %v236_v12, 7  ;;  %v259_v27 = vrot.slane %v237_v13, 7 }
  0x14   : > { %v260_v28 = vrot.slane %v238_v14, 7  ;;  %v261_v29 = vrot.slane %v239_v15, 7  ;;  %v1438_v34 = vsel %vm272_vm0, 0.0, %v255_v18  ;;  %v1444_v36 = vsel %vm344_vm1, %v345_v21, %v346_v22 }
  0x15   : > { %v1447_v37 = vsel %vm272_vm0, 0.0, %v256_v24  ;;  %v1450_v38 = vsel %vm272_vm0, 0.0, %v257_v25  ;;  %v1453_v39 = vsel %vm272_vm0, 0.0, %v258_v26  ;;  %v1456_v40 = vsel %vm272_vm0, 0.0, %v259_v27 }
  0x16   : > { %v1459_v41 = vsel %vm272_vm0, 0.0, %v260_v28  ;;  %v1462_v42 = vsel %vm272_vm0, 0.0, %v261_v29  ;;  %v1465_v43 = vsel %vm272_vm0, %v255_v18, 0.0  ;;  %v1468_v44 = vsel %vm272_vm0, %v256_v24, 0.0 }
  0x17   : > { %2163 = vst [vmem:[#allocation4_spill] sm:$0xff] %v1462_v42  ;;  %v1471_v45 = vsel %vm272_vm0, %v257_v25, 0.0  ;;  %v1474_v46 = vsel %vm272_vm0, %v258_v26, 0.0  ;;  %v1477_v47 = vsel %vm272_vm0, %v259_v27, 0.0  ;;  %v1480_v48 = vsel %vm272_vm0, %v260_v28, 0.0 }
  0x18   : > { %2164 = vst [vmem:[#allocation5_spill] sm:$0xff] %v1477_v47  ;;  %v1483_v49 = vsel %vm272_vm0, %v261_v29, 0.0  ;;  %v296_v50 = vmul.f32 %v1403_v6, %v1438_v34  ;;  %v297_v51 = vmul.f32 %v1403_v6, %v1447_v37  ;;  %v298_v52 = vmul.f32 %v1403_v6, %v1450_v38 }
  0x19   : > { %2165 = vst [vmem:[#allocation6_spill] sm:$0xff] %v1480_v48  ;;  %v299_v53 = vmul.f32 %v1403_v6, %v1453_v39  ;;  %v300_v54 = vmul.f32 %v1403_v6, %v1456_v40  ;;  %v314_v55 = vmul.f32 %v1390_v3, %v1438_v34  ;;  %v315_v56 = vmul.f32 %v1390_v3, %v1465_v43 }
  0x1a   : > { %2166 = vst [vmem:[#allocation7_spill] sm:$0xff] %v1483_v49  ;;  %v316_v57 = vmul.f32 %v1390_v3, %v1447_v37  ;;  %v317_v58 = vmul.f32 %v1390_v3, %v1468_v44  ;;  %v318_v59 = vmul.f32 %v1390_v3, %v1450_v38  ;;  %v319_v60 = vmul.f32 %v1390_v3, %v1471_v45 }
  0x1b   : > { %v320_v61 = vmul.f32 %v1390_v3, %v1453_v39  ;;  %v321_v62 = vmul.f32 %v1390_v3, %v1474_v46  ;;  %v322_v63 = vmul.f32 %v1390_v3, %v1456_v40  ;;  %v323_v0 = vmul.f32 %v1390_v3, %v1477_v47 }
  0x1c   : > { %v324_v1 = vmul.f32 %v1390_v3, %v1459_v41  ;;  %v325_v2 = vmul.f32 %v1390_v3, %v1480_v48  ;;  %v326_v7 = vmul.f32 %v1390_v3, %v1462_v42  ;;  %v327_v8 = vmul.f32 %v1390_v3, %v1483_v49 }
  0x1d   : > { %v301_v9 = vmul.f32 %v1403_v6, %v1459_v41  ;;  %v302_v10 = vmul.f32 %v1403_v6, %v1462_v42  ;;  %v348_v11 = vrot.slane %v314_v55, 1  ;;  %v349_v12 = vrot.slane %v315_v56, 1 }
  0x1e   : > { %v351_v13 = vrot.slane %v316_v57, 1  ;;  %v352_v14 = vrot.slane %v317_v58, 1  ;;  %v354_v15 = vrot.slane %v318_v59, 1  ;;  %v355_v18 = vrot.slane %v319_v60, 1 }
  0x1f   : > { %v357_v20 = vrot.slane %v320_v61, 1  ;;  %v358_v21 = vrot.slane %v321_v62, 1  ;;  %v360_v22 = vrot.slane %v322_v63, 1  ;;  %v361_v24 = vrot.slane %v323_v0, 1 }
  0x20   : > { %v363_v25 = vrot.slane %v324_v1, 1  ;;  %v364_v26 = vrot.slane %v325_v2, 1  ;;  %v366_v27 = vrot.slane %v326_v7, 1  ;;  %v367_v3 = vrot.slane %v327_v8, 1 }
  0x21   : > { %v304_v28 = vadd.f32 %v1419_v19, %v296_v50  ;;  %v305_v29 = vadd.f32 %v1419_v19, %v297_v51  ;;  %v306_v6 = vadd.f32 %v1419_v19, %v298_v52  ;;  %v307_v55 = vadd.f32 %v1419_v19, %v299_v53 }
  0x22   : > { %v308_v56 = vadd.f32 %v1419_v19, %v300_v54  ;;  %v309_v57 = vadd.f32 %v1419_v19, %v301_v9  ;;  %v310_v58 = vadd.f32 %v1419_v19, %v302_v10  ;;  %v350_v59 = vsel %vm344_vm1, %v348_v11, %v349_v12 }
  0x23   : > { %v353_v60 = vsel %vm344_vm1, %v351_v13, %v352_v14  ;;  %v356_v61 = vsel %vm344_vm1, %v354_v15, %v355_v18  ;;  %v359_v50 = vsel %vm344_vm1, %v357_v20, %v358_v21  ;;  %v362_v51 = vsel %vm344_vm1, %v360_v22, %v361_v24 }
  0x24   : > { %v365_v52 = vsel %vm344_vm1, %v363_v25, %v364_v26  ;;  %v368_v53 = vsel %vm344_vm1, %v366_v27, %v367_v3  ;;  %v388_v54 = vmul.f32 %v1414_v17, %v1438_v34  ;;  %v389_v19 = vmul.f32 %v1414_v17, %v1465_v43 }
  0x25   : > { %v390_v62 = vmul.f32 %v1414_v17, %v1447_v37  ;;  %v391_v63 = vmul.f32 %v1414_v17, %v1468_v44  ;;  %v392_v0 = vmul.f32 %v1414_v17, %v1450_v38  ;;  %v393_v1 = vmul.f32 %v1414_v17, %v1471_v45 }
  0x26   : > { %v394_v2 = vmul.f32 %v1414_v17, %v1453_v39  ;;  %v395_v7 = vmul.f32 %v1414_v17, %v1474_v46  ;;  %v396_v8 = vmul.f32 %v1414_v17, %v1456_v40  ;;  %v397_v9 = vmul.f32 %v1414_v17, %v1477_v47 }
  0x27   : > { %v398_v10 = vmul.f32 %v1414_v17, %v1459_v41  ;;  %v399_v11 = vmul.f32 %v1414_v17, %v1480_v48  ;;  %v400_v12 = vmul.f32 %v1414_v17, %v1462_v42  ;;  %v401_v13 = vmul.f32 %v1414_v17, %v1483_v49 }
  0x28   : > { %v419_v14 = vrot.slane %v1427_v30, 2  ;;  %v420_v15 = vrot.slane %v1431_v31, 2  ;;  %v422_v18 = vrot.slane %v388_v54, 2  ;;  %v423_v20 = vrot.slane %v389_v19, 2 }
  0x29   : > { %v425_v21 = vrot.slane %v390_v62, 2  ;;  %v426_v22 = vrot.slane %v391_v63, 2  ;;  %v428_v24 = vrot.slane %v392_v0, 2  ;;  %v429_v25 = vrot.slane %v393_v1, 2 }
  0x2a   : > { %v431_v26 = vrot.slane %v394_v2, 2  ;;  %v432_v27 = vrot.slane %v395_v7, 2  ;;  %v434_v3 = vrot.slane %v396_v8, 2  ;;  %v435_v33 = vrot.slane %v397_v9, 2 }
  0x2b   : > { %v437_v5 = vrot.slane %v398_v10, 2  ;;  %v438_v4 = vrot.slane %v399_v11, 2  ;;  %v440_v48 = vrot.slane %v400_v12, 2  ;;  %v441_v47 = vrot.slane %v401_v13, 2 }
  0x2c   : > { %v377_v17 = vadd.f32 %v1444_v36, %v1441_v35  ;;  %v378_v30 = vadd.f32 %v350_v59, %v304_v28  ;;  %v379_v49 = vadd.f32 %v353_v60, %v305_v29  ;;  %v380_v31 = vadd.f32 %v356_v61, %v306_v6 }
  0x2d   : > { %v381_v54 = vadd.f32 %v359_v50, %v307_v55  ;;  %v382_v19 = vadd.f32 %v362_v51, %v308_v56  ;;  %v383_v62 = vadd.f32 %v365_v52, %v309_v57  ;;  %v421_v63 = vsel %vm418_vm2, %v419_v14, %v420_v15 }
  0x2e   : > { %v384_v0 = vadd.f32 %v368_v53, %v310_v58  ;;  %v424_v1 = vsel %vm418_vm2, %v422_v18, %v423_v20  ;;  %v427_v2 = vsel %vm418_vm2, %v425_v21, %v426_v22  ;;  %v430_v7 = vsel %vm418_vm2, %v428_v24, %v429_v25 }
  0x2f   : > { %v433_v8 = vsel %vm418_vm2, %v431_v26, %v432_v27  ;;  %v436_v9 = vsel %vm418_vm2, %v434_v3, %v435_v33  ;;  %v439_v35 = vsel %vm418_vm2, %v437_v5, %v438_v4  ;;  %v442_v36 = vsel %vm418_vm2, %v440_v48, %v441_v47  ;;  %v2171_v26 = vld [vmem:[#allocation6_spill] sm:$0xff] }
  0x30   : > { %v2167_v28 = vrot.slane %v1423_v23, 7  ;;  %v451_v6 = vadd.f32 %v421_v63, %v377_v17  ;;  %v460_v55 = vmul.f32 %v1434_v32, %v1438_v34  ;;  %v476_v56 = vperm.slane %v1412_v16, 1  ;;  %v2172_v17 = vld [vmem:[#allocation7_spill] sm:$0xff] }
  0x31   : > { %v452_v33 = vadd.f32 %v424_v1, %v378_v30  ;;  %v453_v4 = vadd.f32 %v427_v2, %v379_v49  ;;  %v454_v5 = vadd.f32 %v430_v7, %v380_v31  ;;  %v455_v47 = vadd.f32 %v433_v8, %v381_v54 }
  0x32   : > { %v1584_v29 = vsel %vm272_vm0, 0.0, %v2167_v28  ;;  %v2169_v57 = vmov %v2167_v28  ;;  %v456_v48 = vadd.f32 %v436_v9, %v382_v19  ;;  %v457_v59 = vadd.f32 %v439_v35, %v383_v62 }
  0x33   : > { %2168 = vst [vmem:[#allocation8_spill] sm:$0xff] %v1584_v29  ;;  %v1592_v58 = vsel %vm272_vm0, %v2169_v57, 0.0  ;;  %v458_v60 = vadd.f32 %v442_v36, %v384_v0  ;;  %v461_v61 = vmul.f32 %v1434_v32, %v1447_v37  ;;  %v462_v50 = vmul.f32 %v1434_v32, %v1450_v38 }
  0x34   : > { %v463_v51 = vmul.f32 %v1434_v32, %v1453_v39  ;;  %v464_v23 = vmul.f32 %v1434_v32, %v1456_v40  ;;  %v465_v49 = vmul.f32 %v1434_v32, %v1459_v41  ;;  %v466_v52 = vmul.f32 %v1434_v32, %v1462_v42 }
  0x35   : > { %v467_v53 = vmul.f32 %v1434_v32, %v1584_v29  ;;  %v468_v10 = vadd.f32 %v460_v55, %v451_v6  ;;  %v477_v11 = vmul.f32 %v476_v56, %v1438_v34  ;;  %v478_v12 = vmul.f32 %v476_v56, %v1465_v43  ;;  %v2170_v32 = vld [vmem:[#allocation5_spill] sm:$0xff] }
  0x36   : > { %v479_v13 = vmul.f32 %v476_v56, %v1447_v37  ;;  %v480_v14 = vmul.f32 %v476_v56, %v1468_v44  ;;  %v481_v15 = vmul.f32 %v476_v56, %v1450_v38  ;;  %v482_v18 = vmul.f32 %v476_v56, %v1471_v45 }
  0x37   : > { %v483_v20 = vmul.f32 %v476_v56, %v1453_v39  ;;  %v484_v21 = vmul.f32 %v476_v56, %v1474_v46  ;;  %v485_v22 = vmul.f32 %v476_v56, %v1456_v40  ;;  %v486_v24 = vmul.f32 %v476_v56, %v2170_v32 }
  0x38   : > { %v487_v25 = vmul.f32 %v476_v56, %v1459_v41  ;;  %v488_v27 = vmul.f32 %v476_v56, %v2171_v26  ;;  %v489_v3 = vmul.f32 %v476_v56, %v1462_v42  ;;  %v490_v30 = vmul.f32 %v476_v56, %v2172_v17 }
  0x39   : > { %v491_v31 = vmul.f32 %v476_v56, %v1584_v29  ;;  %v492_v54 = vmul.f32 %v476_v56, %v1592_v58  ;;  %v509_v19 = vrot.slane %v477_v11, 1  ;;  %v510_v62 = vrot.slane %v478_v12, 1 }
  0x3a   : > { %v512_v63 = vrot.slane %v479_v13, 1  ;;  %v513_v0 = vrot.slane %v480_v14, 1  ;;  %v515_v1 = vrot.slane %v481_v15, 1  ;;  %v516_v2 = vrot.slane %v482_v18, 1 }
  0x3b   : > { %v518_v7 = vrot.slane %v483_v20, 1  ;;  %v519_v8 = vrot.slane %v484_v21, 1  ;;  %v469_v9 = vadd.f32 %v461_v61, %v452_v33  ;;  %v470_v35 = vadd.f32 %v462_v50, %v453_v4 }
  0x3c   : > { %v521_v36 = vrot.slane %v485_v22, 1  ;;  %v522_v28 = vrot.slane %v486_v24, 1  ;;  %v524_v6 = vrot.slane %v487_v25, 1  ;;  %v525_v55 = vrot.slane %v488_v27, 1 }
  0x3d   : > { %v527_v57 = vrot.slane %v489_v3, 1  ;;  %v528_v17 = vrot.slane %v490_v30, 1  ;;  %v471_v42 = vadd.f32 %v463_v51, %v454_v5  ;;  %v511_v29 = vsel %vm344_vm1, %v509_v19, %v510_v62 }
  0x3e   : > { %v530_v56 = vrot.slane %v491_v31, 1  ;;  %v531_v11 = vrot.slane %v492_v54, 1  ;;  %v514_v12 = vsel %vm344_vm1, %v512_v63, %v513_v0  ;;  %v517_v13 = vsel %vm344_vm1, %v515_v1, %v516_v2  ;;  %v243_v0 = vld [vmem:[%s2144_s1 + $0x8] sm:$0x7] }
  0x3f   : > { %v520_v14 = vsel %vm344_vm1, %v518_v7, %v519_v8  ;;  %v549_v33 = vperm.slane %v1412_v16, 2  ;;  %v472_v4 = vadd.f32 %v464_v23, %v455_v47  ;;  %v473_v61 = vadd.f32 %v465_v49, %v456_v48 }
  0x40   : > { %v474_v50 = vadd.f32 %v466_v52, %v457_v59  ;;  %v475_v15 = vadd.f32 %v467_v53, %v458_v60  ;;  %v523_v18 = vsel %vm344_vm1, %v521_v36, %v522_v28  ;;  %v526_v5 = vsel %vm344_vm1, %v524_v6, %v525_v55  ;;  %v2173_v52 = vld [vmem:[#allocation4_spill] sm:$0xff] }
  0x41   : > { %v529_v51 = vsel %vm344_vm1, %v527_v57, %v528_v17  ;;  %v541_v20 = vadd.f32 %v511_v29, %v468_v10  ;;  %v532_v21 = vsel %vm344_vm1, %v530_v56, %v531_v11  ;;  %v542_v22 = vadd.f32 %v514_v12, %v469_v9  ;;  %v2174_v10 = vld [vmem:[#allocation7_spill] sm:$0xff]  ;;  %v2175_v17 = vld [vmem:[#allocation8_spill] sm:$0xff] }
  0x42   : > { %v543_v24 = vadd.f32 %v517_v13, %v470_v35  ;;  %v544_v25 = vadd.f32 %v520_v14, %v471_v42  ;;  %v550_v27 = vmul.f32 %v549_v33, %v1438_v34  ;;  %v551_v16 = vmul.f32 %v549_v33, %v1465_v43 }
  0x43   : > { %v552_v47 = vmul.f32 %v549_v33, %v1447_v37  ;;  %v553_v48 = vmul.f32 %v549_v33, %v1468_v44  ;;  %v554_v59 = vmul.f32 %v549_v33, %v1450_v38  ;;  %v555_v60 = vmul.f32 %v549_v33, %v1471_v45 }
  0x44   : > { %v556_v23 = vmul.f32 %v549_v33, %v1453_v39  ;;  %v557_v29 = vmul.f32 %v549_v33, %v1474_v46  ;;  %v558_v49 = vmul.f32 %v549_v33, %v1456_v40  ;;  %v559_v42 = vmul.f32 %v549_v33, %v2170_v32 }
  0x45   : > { %v560_v34 = vmul.f32 %v549_v33, %v1459_v41  ;;  %v561_v43 = vmul.f32 %v549_v33, %v2171_v26  ;;  %v562_v53 = vmul.f32 %v549_v33, %v2173_v52  ;;  %v563_v3 = vmul.f32 %v549_v33, %v2174_v10 }
  0x46   : > { %v564_v30 = vmul.f32 %v549_v33, %v2175_v17  ;;  %v565_v31 = vmul.f32 %v549_v33, %v1592_v58  ;;  %v582_v54 = vrot.slane %v550_v27, 2  ;;  %v583_v19 = vrot.slane %v551_v16, 2 }
  0x47   : > { %v585_v62 = vrot.slane %v552_v47, 2  ;;  %v586_v63 = vrot.slane %v553_v48, 2  ;;  %v588_v1 = vrot.slane %v554_v59, 2  ;;  %v589_v2 = vrot.slane %v555_v60, 2 }
  0x48   : > { %v591_v7 = vrot.slane %v556_v23, 2  ;;  %v592_v8 = vrot.slane %v557_v29, 2  ;;  %v594_v9 = vrot.slane %v558_v49, 2  ;;  %v595_v35 = vrot.slane %v559_v42, 2 }
  0x49   : > { %v597_v36 = vrot.slane %v560_v34, 2  ;;  %v598_v28 = vrot.slane %v561_v43, 2  ;;  %v600_v6 = vrot.slane %v562_v53, 2  ;;  %v601_v55 = vrot.slane %v563_v3, 2 }
  0x4a   : > { %v603_v57 = vrot.slane %v564_v30, 2  ;;  %v604_v56 = vrot.slane %v565_v31, 2  ;;  %v545_v11 = vadd.f32 %v523_v18, %v472_v4  ;;  %v584_v12 = vsel %vm418_vm2, %v582_v54, %v583_v19  ;;  %v2176_v31 = vld [vmem:[#allocation2_spill] sm:$0xff] }
  0x4b   : > { %v587_v13 = vsel %vm418_vm2, %v585_v62, %v586_v63  ;;  %v622_v14 = vperm.slane %v243_v0, 0  ;;  %v546_v33 = vadd.f32 %v526_v5, %v473_v61  ;;  %v547_v27 = vadd.f32 %v529_v51, %v474_v50 }
  0x4c   : > { %v548_v16 = vadd.f32 %v532_v21, %v475_v15  ;;  %v590_v47 = vsel %vm418_vm2, %v588_v1, %v589_v2  ;;  %v593_v48 = vsel %vm418_vm2, %v591_v7, %v592_v8  ;;  %v596_v59 = vsel %vm418_vm2, %v594_v9, %v595_v35 }
  0x4d   : > { %v599_v60 = vsel %vm418_vm2, %v597_v36, %v598_v28  ;;  %v639_v23 = vperm.slane %v243_v0, 1  ;;  %v602_v29 = vsel %vm418_vm2, %v600_v6, %v601_v55  ;;  %v605_v4 = vsel %vm418_vm2, %v603_v57, %v604_v56 }
  0x4e   : > { %v614_v18 = vadd.f32 %v584_v12, %v541_v20  ;;  %v615_v49 = vadd.f32 %v587_v13, %v542_v22  ;;  %v616_v42 = vadd.f32 %v590_v47, %v543_v24  ;;  %v623_v61 = vmul.f32 %v622_v14, %v1447_v37  ;;  %v2177_v47 = vld [vmem:[#allocation3_spill] sm:$0xff] }
  0x4f   : > { %v624_v50 = vmul.f32 %v622_v14, %v1450_v38  ;;  %v625_v15 = vmul.f32 %v622_v14, %v1453_v39  ;;  %v617_v5 = vadd.f32 %v593_v48, %v544_v25  ;;  %v1663_v51 = vadd.f32 %v596_v59, %v545_v11 }
  0x50   : > { %v1665_v21 = vadd.f32 %v599_v60, %v546_v33  ;;  %v1667_v34 = vperm.slane %v243_v0, 2  ;;  %v1669_v43 = vadd.f32 %v602_v29, %v547_v27  ;;  %v1671_v53 = vadd.f32 %v605_v4, %v548_v16 }
  0x51   : > { %v640_v20 = vmul.f32 %v639_v23, %v1447_v37  ;;  %v641_v22 = vmul.f32 %v639_v23, %v1468_v44  ;;  %v626_v24 = vmul.f32 %v622_v14, %v1456_v40  ;;  %v1677_v3 = vmul.f32 %v622_v14, %v1459_v41 }
  0x52   : > { %v1680_v25 = vmul.f32 %v622_v14, %v2173_v52  ;;  %v1683_v30 = vmul.f32 %v622_v14, %v2175_v17  ;;  %v1686_v54 = vmul.f32 %v622_v14, %v2176_v31  ;;  %v631_v19 = vadd.f32 %v623_v61, %v614_v18 }
  0x53   : > { %v632_v62 = vadd.f32 %v624_v50, %v615_v49  ;;  %v633_v63 = vadd.f32 %v625_v15, %v616_v42  ;;  %v642_v0 = vmul.f32 %v639_v23, %v1450_v38  ;;  %v643_v1 = vmul.f32 %v639_v23, %v1471_v45 }
  0x54   : > { %v644_v2 = vmul.f32 %v639_v23, %v1453_v39  ;;  %v645_v7 = vmul.f32 %v639_v23, %v1474_v46  ;;  %v646_v8 = vmul.f32 %v639_v23, %v1456_v40  ;;  %v647_v9 = vmul.f32 %v639_v23, %v2170_v32 }
  0x55   : > { %v672_v35 = vrot.slane %v640_v20, 1  ;;  %v673_v36 = vrot.slane %v641_v22, 1  ;;  %v634_v28 = vadd.f32 %v626_v24, %v617_v5  ;;  %v648_v6 = vmul.f32 %v639_v23, %v1459_v41 }
  0x56   : > { %v649_v55 = vmul.f32 %v639_v23, %v2171_v26  ;;  %v650_v57 = vmul.f32 %v639_v23, %v2173_v52  ;;  %v651_v56 = vmul.f32 %v639_v23, %v2174_v10  ;;  %v652_v11 = vmul.f32 %v639_v23, %v2175_v17 }
  0x57   : > { %v653_v12 = vmul.f32 %v639_v23, %v1592_v58  ;;  %v654_v13 = vmul.f32 %v639_v23, %v2176_v31  ;;  %v675_v14 = vrot.slane %v642_v0, 1  ;;  %v676_v33 = vrot.slane %v643_v1, 1 }
  0x58   : > { %v678_v27 = vrot.slane %v644_v2, 1  ;;  %v679_v16 = vrot.slane %v645_v7, 1  ;;  %v655_v48 = vmul.f32 %v639_v23, %v2177_v47  ;;  %v674_v59 = vsel %vm344_vm1, %v672_v35, %v673_v36 }
  0x59   : > { %v681_v60 = vrot.slane %v646_v8, 1  ;;  %v682_v29 = vrot.slane %v647_v9, 1  ;;  %v713_v4 = vmul.f32 %v1667_v34, %v1447_v37  ;;  %v714_v18 = vmul.f32 %v1667_v34, %v1468_v44 }
  0x5a   : > { %v715_v49 = vmul.f32 %v1667_v34, %v1450_v38  ;;  %v716_v42 = vmul.f32 %v1667_v34, %v1471_v45  ;;  %v717_v61 = vmul.f32 %v1667_v34, %v1453_v39  ;;  %v718_v23 = vmul.f32 %v1667_v34, %v1474_v46 }
  0x5b   : > { %v719_v50 = vmul.f32 %v1667_v34, %v1456_v40  ;;  %v720_v37 = vmul.f32 %v1667_v34, %v2170_v32  ;;  %v677_v44 = vsel %vm344_vm1, %v675_v14, %v676_v33  ;;  %v680_v15 = vsel %vm344_vm1, %v678_v27, %v679_v16 }
  0x5c   : > { %v684_v38 = vrot.slane %v648_v6, 1  ;;  %v685_v5 = vrot.slane %v649_v55, 1  ;;  %v683_v45 = vsel %vm344_vm1, %v681_v60, %v682_v29  ;;  %v687_v20 = vrot.slane %v650_v57, 1 }
  0x5d   : > { %v688_v22 = vrot.slane %v651_v56, 1  ;;  %v704_v39 = vadd.f32 %v674_v59, %v631_v19  ;;  %v745_v24 = vrot.slane %v713_v4, 2  ;;  %v746_v0 = vrot.slane %v714_v18, 2 }
  0x5e   : > { %v748_v46 = vrot.slane %v715_v49, 2  ;;  %v749_v1 = vrot.slane %v716_v42, 2  ;;  %v751_v2 = vrot.slane %v717_v61, 2  ;;  %v752_v40 = vrot.slane %v718_v23, 2 }
  0x5f   : > { %v754_v7 = vrot.slane %v719_v50, 2  ;;  %v755_v8 = vrot.slane %v720_v37, 2  ;;  %v690_v32 = vrot.slane %v652_v11, 1  ;;  %v705_v9 = vadd.f32 %v677_v44, %v632_v62 }
  0x60   : > { %v706_v35 = vadd.f32 %v680_v15, %v633_v63  ;;  %v747_v36 = vsel %vm418_vm2, %v745_v24, %v746_v0  ;;  %v691_v6 = vrot.slane %v653_v12, 1  ;;  %v707_v55 = vadd.f32 %v683_v45, %v634_v28 }
  0x61   : > { %v750_v14 = vsel %vm418_vm2, %v748_v46, %v749_v1  ;;  %v753_v57 = vsel %vm418_vm2, %v751_v2, %v752_v40  ;;  %v635_v19 = vadd.f32 %v1677_v3, %v1663_v51  ;;  %v693_v56 = vrot.slane %v654_v13, 1 }
  0x62   : > { %v694_v33 = vrot.slane %v655_v48, 1  ;;  %v756_v27 = vsel %vm418_vm2, %v754_v7, %v755_v8  ;;  %v636_v11 = vadd.f32 %v1680_v25, %v1665_v21  ;;  %v686_v62 = vsel %vm344_vm1, %v684_v38, %v685_v5 }
  0x63   : > { %v1731_v63 = vadd.f32 %v747_v36, %v704_v39  ;;  %v637_v28 = vadd.f32 %v1683_v30, %v1669_v43  ;;  %v689_v12 = vsel %vm344_vm1, %v687_v20, %v688_v22  ;;  %v1736_v16 = vadd.f32 %v750_v14, %v705_v9 }
  0x64   : > { %v1738_v59 = vadd.f32 %v753_v57, %v706_v35  ;;  %v1742_v51 = vadd.f32 %v1686_v54, %v1671_v53  ;;  %v692_v3 = vsel %vm344_vm1, %v690_v32, %v691_v6  ;;  %v721_v21 = vmul.f32 %v1667_v34, %v1459_v41 }
  0x65   : > { %v1747_v25 = vadd.f32 %v756_v27, %v707_v55  ;;  %v1750_v13 = vsel %vm344_vm1, %v693_v56, %v694_v33  ;;  %v708_v43 = vadd.f32 %v686_v62, %v635_v19  ;;  %v722_v30 = vmul.f32 %v1667_v34, %v2171_v26 }
  0x66   : > { %v723_v48 = vmul.f32 %v1667_v34, %v2173_v52  ;;  %v1756_v60 = vadd.f32 %v689_v12, %v636_v11  ;;  %v724_v53 = vmul.f32 %v1667_v34, %v2174_v10  ;;  %v1762_v41 = vmul.f32 %v1667_v34, %v2175_v17 }
  0x67   : > { %v1765_v54 = vmul.f32 0.70710677, %v1731_v63  ;;  %v1769_v29 = vmul.f32 %v1667_v34, %v1592_v58  ;;  %v1773_v26 = vmul.f32 %v1667_v34, %v2176_v31  ;;  %v1776_v52 = vmul.f32 0.70710677, %v1736_v16 }
  0x68   : > { %v1779_v10 = vmul.f32 0.70710677, %v1738_v59  ;;  %v1783_v17 = vmul.f32 %v1667_v34, %v2177_v47  ;;  %v757_v4 = vrot.slane %v721_v21, 2  ;;  %v1786_v18 = vmul.f32 0.70710677, %v1747_v25 }
  0x69   : > { %v801_v58 = vmul.f32 %v1765_v54, %v1765_v54  ;;  %v758_v49 = vrot.slane %v722_v30, 2  ;;  %v760_v31 = vrot.slane %v723_v48, 2  ;;  %v841_v42 = vmul.f32 %v1776_v52, %v1776_v52 }
  0x6a   : > { %v881_v61 = vmul.f32 %v1779_v10, %v1779_v10  ;;  %v761_v23 = vrot.slane %v724_v53, 2  ;;  %v763_v50 = vrot.slane %v1762_v41, 2  ;;  %v921_v47 = vmul.f32 %v1786_v18, %v1786_v18 }
  0x6b   : > { %v1795_v34 = vmin.f32 %v801_v58, 16.0  ;;  %v764_v37 = vrot.slane %v1769_v29, 2  ;;  %v766_v44 = vrot.slane %v1773_v26, 2  ;;  %v1801_v15 = vmin.f32 %v841_v42, 16.0 }
  0x6c   : > { %v1803_v38 = vmin.f32 %v881_v61, 16.0  ;;  %v767_v5 = vrot.slane %v1783_v17, 2  ;;  %v1808_v22 = vmin.f32 %v921_v47, 16.0  ;;  %v1810_v39 = vadd.f32 %v692_v3, %v637_v28 }
  0x6d   : > { %v803_v45 = vmul.f32 2.1237322e-06, %v1795_v34  ;;  %v814_v20 = vmul.f32 3.8918573e-05, %v1795_v34  ;;  %v843_v24 = vmul.f32 2.1237322e-06, %v1801_v15  ;;  %v759_v1 = vsel %vm418_vm2, %v757_v4, %v758_v49 }
  0x6e   : > { %v854_v0 = vmul.f32 3.8918573e-05, %v1801_v15  ;;  %v883_v46 = vmul.f32 2.1237322e-06, %v1803_v38  ;;  %v894_v7 = vmul.f32 3.8918573e-05, %v1803_v38  ;;  %v762_v8 = vsel %vm418_vm2, %v760_v31, %v761_v23 }
  0x6f   : > { %v804_v2 = vadd.f32 0.00028619796, %v803_v45  ;;  %v815_v40 = vadd.f32 0.001143296, %v814_v20  ;;  %v844_v32 = vadd.f32 0.00028619796, %v843_v24  ;;  %v1826_v12 = vadd.f32 %v759_v1, %v708_v43 }
  0x70   : > { %v855_v9 = vadd.f32 0.001143296, %v854_v0  ;;  %v884_v35 = vadd.f32 0.00028619796, %v883_v46  ;;  %v895_v55 = vadd.f32 0.001143296, %v894_v7 }
  0x71   : > { %v805_v36 = vmul.f32 %v804_v2, %v1795_v34  ;;  %v816_v6 = vmul.f32 %v815_v40, %v1795_v34  ;;  %v923_v14 = vmul.f32 2.1237322e-06, %v1808_v22  ;;  %v845_v57 = vmul.f32 %v844_v32, %v1801_v15 }
  0x72   : > { %v856_v19 = vmul.f32 %v855_v9, %v1801_v15  ;;  %v885_v56 = vmul.f32 %v884_v35, %v1803_v38  ;;  %v934_v33 = vmul.f32 3.8918573e-05, %v1808_v22  ;;  %v896_v62 = vmul.f32 %v895_v55, %v1803_v38 }
  0x73   : > { %v806_v27 = vadd.f32 0.0036580483, %v805_v36  ;;  %v817_v11 = vadd.f32 0.014752088, %v816_v6  ;;  %v924_v28 = vadd.f32 0.00028619796, %v923_v14  ;;  %v765_v40 = vsel %vm418_vm2, %v763_v50, %v764_v37 }
  0x74   : > { %v846_v3 = vadd.f32 0.0036580483, %v845_v57  ;;  %v857_v21 = vadd.f32 0.014752088, %v856_v19  ;;  %v886_v30 = vadd.f32 0.0036580483, %v885_v56  ;;  %v711_v14 = vadd.f32 %v1750_v13, %v1742_v51 }
  0x75   : > { %v807_v48 = vmul.f32 %v806_v27, %v1795_v34  ;;  %v818_v53 = vmul.f32 %v817_v11, %v1795_v34  ;;  %v897_v41 = vadd.f32 0.014752088, %v896_v62  ;;  %v925_v29 = vmul.f32 %v924_v28, %v1808_v22 }
  0x76   : > { %v847_v4 = vmul.f32 %v846_v3, %v1801_v15  ;;  %v858_v58 = vmul.f32 %v857_v21, %v1801_v15  ;;  %v887_v49 = vmul.f32 %v886_v30, %v1803_v38  ;;  %v935_v31 = vadd.f32 0.001143296, %v934_v33 }
  0x77   : > { %v808_v42 = vadd.f32 0.05243302, %v807_v48  ;;  %v819_v43 = vadd.f32 0.112945676, %v818_v53  ;;  %v898_v61 = vmul.f32 %v897_v41, %v1803_v38  ;;  %v926_v23 = vadd.f32 0.0036580483, %v925_v29 }
  0x78   : > { %v848_v47 = vadd.f32 0.05243302, %v847_v4  ;;  %v859_v45 = vadd.f32 0.112945676, %v858_v58  ;;  %v888_v20 = vadd.f32 0.05243302, %v887_v49  ;;  %v936_v24 = vmul.f32 %v935_v31, %v1808_v22 }
  0x79   : > { %v1837_v0 = vmul.f32 0.70710677, %v1826_v12  ;;  %v809_v46 = vmul.f32 %v808_v42, %v1795_v34  ;;  %v820_v1 = vmul.f32 %v819_v43, %v1795_v34  ;;  %v899_v2 = vadd.f32 0.112945676, %v898_v61 }
  0x7a   : > { %v860_v7 = vmul.f32 %v859_v45, %v1801_v15  ;;  %v927_v32 = vmul.f32 %v926_v23, %v1808_v22  ;;  %v937_v9 = vadd.f32 0.014752088, %v936_v24  ;;  %v849_v36 = vmul.f32 %v848_v47, %v1801_v15 }
  0x7b   : > { %v821_v35 = vadd.f32 0.4994258, %v820_v1  ;;  %v889_v6 = vmul.f32 %v888_v20, %v1803_v38  ;;  %v900_v55 = vmul.f32 %v899_v2, %v1803_v38  ;;  %v810_v57 = vadd.f32 0.18741608, %v809_v46 }
  0x7c   : > { %v861_v19 = vadd.f32 0.4994258, %v860_v7  ;;  %v938_v56 = vmul.f32 %v937_v9, %v1808_v22  ;;  %v1851_v50 = vadd.f32 %v762_v8, %v1756_v60  ;;  %v961_v27 = vmul.f32 %v1837_v0, %v1837_v0 }
  0x7d   : > { %v822_v37 = vmul.f32 %v821_v35, %v1795_v34  ;;  %v901_v33 = vadd.f32 0.4994258, %v900_v55  ;;  %v1857_v11 = vadd.f32 %v765_v40, %v1810_v39  ;;  %v928_v28 = vadd.f32 0.05243302, %v927_v32 }
  0x7e   : > { %v862_v62 = vmul.f32 %v861_v19, %v1801_v15  ;;  %v939_v51 = vadd.f32 0.112945676, %v938_v56  ;;  %v768_v13 = vsel %vm418_vm2, %v766_v44, %v767_v5  ;;  %v850_v8 = vadd.f32 0.18741608, %v849_v36 }
  0x7f   : > { %v1865_v60 = vadd.f32 1.0, %v822_v37  ;;  %v890_v3 = vadd.f32 0.18741608, %v889_v6  ;;  %v811_v21 = vmul.f32 %v810_v57, %v1795_v34  ;;  %v902_v39 = vmul.f32 %v901_v33, %v1803_v38 }
  0x80   : > { %v1868_v30 = vadd.f32 1.0, %v862_v62  ;;  %v940_v48 = vmul.f32 %v939_v51, %v1808_v22  ;;  %v1873_v53 = vmin.f32 %v961_v27, 16.0  ;;  %v1875_v17 = vadd.f32 %v768_v13, %v711_v14 }
  0x81   : > { %1305 = vrcp.f32 %v1865_v60  ;;  %v1878_v26 = vmul.f32 0.70710677, %v1851_v50  ;;  %v1881_v44 = vmul.f32 0.70710677, %v1857_v11  ;;  %v1885_v34 = vmul.f32 0.5, %v1731_v63 }
  0x82   : > { %1307 = vrcp.f32 %v1868_v30  ;;  %v851_v5 = vmul.f32 %v850_v8, %v1801_v15  ;;  %v929_v41 = vmul.f32 %v928_v28, %v1808_v22  ;;  %v812_v29 = vadd.f32 1.1283791, %v811_v21 }
  0x83   : > { %v891_v4 = vmul.f32 %v890_v3, %v1803_v38  ;;  %v1890_v58 = vadd.f32 1.0, %v902_v39  ;;  %v941_v49 = vadd.f32 0.4994258, %v940_v48  ;;  %v1893_v31 = vmul.f32 0.5, %v1736_v16 }
  0x84   : > { %v1896_v42 = vmul.f32 0.5, %v1738_v59  ;;  %v963_v43 = vmul.f32 2.1237322e-06, %v1873_v53  ;;  %v974_v63 = vmul.f32 3.8918573e-05, %v1873_v53  ;;  %v1001_v38 = vmul.f32 %v1878_v26, %v1878_v26 }
  0x85   : > { %v1901_v15 = vmul.f32 0.70710677, %v1875_v17  ;;  %1309 = vrcp.f32 %v1890_v58  ;;  %v1041_v61 = vmul.f32 %v1881_v44, %v1881_v44  ;;  %v852_v23 = vadd.f32 1.1283791, %v851_v5 }
  0x86   : > { %v942_v59 = vmul.f32 %v941_v49, %v1808_v22  ;;  %v964_v47 = vadd.f32 0.00028619796, %v963_v43  ;;  %v975_v45 = vadd.f32 0.001143296, %v974_v63  ;;  %v1914_v24 = vmul.f32 %v812_v29, %v1765_v54 }
  0x87   : > { %v1908_v16 = vpop.eup %1305  ;;  %v1918_v1 = vadd.f32 1.1283791, %v891_v4  ;;  %v930_v2 = vadd.f32 0.18741608, %v929_v41  ;;  %vm829_vm3 = vweird.f32 %v1865_v60  ;;  %v835_v40 = vand.u32 2147483648, %v1865_v60 }
  0x88   : > { %v1911_v20 = vpop.eup %1307  ;;  %v825_v46 = vmul.f32 %v1908_v16, %v1865_v60  ;;  %v1924_v32 = vadd.f32 1.0, %v942_v59  ;;  %v875_v35 = vand.u32 2147483648, %v1868_v30  ;;  %v965_v54 = vmul.f32 %v964_v47, %v1873_v53 }
  0x89   : > { %v865_v7 = vmul.f32 %v1911_v20, %v1868_v30  ;;  %v976_v36 = vmul.f32 %v975_v45, %v1873_v53  ;;  %v833_v6 = vand.u32 2147483647, %v1865_v60  ;;  %v1931_v55 = vmul.f32 %v852_v23, %v1776_v52 }
  0x8a   : > { %v826_v9 = vsub.f32 1.0, %v825_v46  ;;  %v873_v14 = vand.u32 2147483647, %v1868_v30  ;;  %1311 = vrcp.f32 %v1924_v32  ;;  %vm869_vm4 = vweird.f32 %v1868_v30 }
  0x8b   : > { %v1935_v57 = vpop.eup %1309  ;;  %v966_v19 = vadd.f32 0.0036580483, %v965_v54  ;;  %v977_v56 = vadd.f32 0.014752088, %v976_v36  ;;  %v1938_v37 = vmin.f32 %v1001_v38, 16.0  ;;  %v1941_v27 = vor.u32 1.1754944e-38, %v835_v40 }
  0x8c   : > { %v827_v33 = vmul.f32 %v1908_v16, %v826_v9  ;;  %v866_v62 = vsub.f32 1.0, %v865_v7  ;;  %v905_v52 = vmul.f32 %v1935_v57, %v1890_v58  ;;  %v1945_v28 = vor.u32 1.1754944e-38, %v875_v35 }
  0x8d   : > { %v931_v51 = vmul.f32 %v930_v2, %v1808_v22  ;;  %v967_v13 = vmul.f32 %v966_v19, %v1873_v53  ;;  %v978_v8 = vmul.f32 %v977_v56, %v1873_v53  ;;  %vm830_vm5 = vweird.f32 %v1908_v16 }
  0x8e   : > { %v906_v3 = vsub.f32 1.0, %v905_v52  ;;  %v913_v21 = vand.u32 2147483647, %v1890_v58  ;;  %v1003_v39 = vmul.f32 2.1237322e-06, %v1938_v37  ;;  %vm1953_vm6 = vcmp.eq.f32.partialorder %v833_v6, 8.507059e+37  ;;  %vm1966_vm8 = vmor %vm829_vm3, %vm830_vm5 }
  0x8f   : > { %vm909_vm7 = vweird.f32 %v1890_v58  ;;  %v968_v5 = vadd.f32 0.05243302, %v967_v13  ;;  %v979_v41 = vadd.f32 0.112945676, %v978_v8  ;;  %v1014_v22 = vmul.f32 3.8918573e-05, %v1938_v37 }
  0x90   : > { %v1959_v29 = vpop.eup %1311  ;;  %v828_v4 = vadd.f32 %v1908_v16, %v827_v33  ;;  %v867_v49 = vmul.f32 %v1911_v20, %v866_v62  ;;  %v915_v43 = vand.u32 2147483648, %v1890_v58  ;;  %v1004_v63 = vadd.f32 0.00028619796, %v1003_v39 }
  0x91   : > { %vm870_vm9 = vweird.f32 %v1911_v20  ;;  %v945_v23 = vmul.f32 %v1959_v29, %v1924_v32  ;;  %vm949_vm10 = vweird.f32 %v1924_v32  ;;  %v953_v59 = vand.u32 2147483647, %v1924_v32 }
  0x92   : > { %vm1975_vm11 = vcmp.eq.f32.partialorder %v873_v14, 8.507059e+37  ;;  %v907_v45 = vmul.f32 %v1935_v57, %v906_v3  ;;  %v955_v60 = vand.u32 2147483648, %v1924_v32  ;;  %v969_v46 = vmul.f32 %v968_v5, %v1873_v53  ;;  %vm1998_vm14 = vmor %vm869_vm4, %vm870_vm9 }
  0x93   : > { %v980_v2 = vmul.f32 %v979_v41, %v1873_v53  ;;  %v946_v40 = vsub.f32 1.0, %v945_v23  ;;  %v1005_v7 = vmul.f32 %v1004_v63, %v1938_v37  ;;  %v1015_v9 = vadd.f32 0.001143296, %v1014_v22 }
  0x94   : > { %v1984_v35 = vmin.f32 %v1041_v61, 16.0  ;;  %v832_v54 = vsel %vm1966_vm8, %v1908_v16, %v828_v4  ;;  %v868_v36 = vadd.f32 %v1911_v20, %v867_v49  ;;  %vm910_vm12 = vweird.f32 %v1935_v57 }
  0x95   : > { %v981_v6 = vadd.f32 0.4994258, %v980_v2  ;;  %v947_v14 = vmul.f32 %v1959_v29, %v946_v40  ;;  %vm950_vm13 = vweird.f32 %v1959_v29  ;;  %v1006_v19 = vadd.f32 0.0036580483, %v1005_v7  ;;  %vm2007_vm15 = vmor %vm909_vm7, %vm910_vm12 }
  0x96   : > { %v1016_v56 = vmul.f32 %v1015_v9, %v1938_v37  ;;  %v908_v16 = vadd.f32 %v1935_v57, %v907_v45  ;;  %v970_v33 = vadd.f32 0.18741608, %v969_v46  ;;  %v1043_v52 = vmul.f32 2.1237322e-06, %v1984_v35  ;;  %vm2022_vm1 = vmor %vm949_vm10, %vm950_vm13 }
  0x97   : > { %v982_v62 = vmul.f32 %v981_v6, %v1873_v53  ;;  %v948_v8 = vadd.f32 %v1959_v29, %v947_v14  ;;  %v1007_v30 = vmul.f32 %v1006_v19, %v1938_v37  ;;  %v1054_v39 = vmul.f32 3.8918573e-05, %v1984_v35 }
  0x98   : > { %v1017_v3 = vadd.f32 0.014752088, %v1016_v56  ;;  %vm2014_vm0 = vcmp.eq.f32.partialorder %v913_v21, 8.507059e+37  ;;  %v932_v41 = vadd.f32 1.1283791, %v931_v51  ;;  %v916_v49 = vor.u32 1.1754944e-38, %v915_v43 }
  0x99   : > { %v983_v22 = vadd.f32 1.0, %v982_v62  ;;  %v1044_v4 = vadd.f32 0.00028619796, %v1043_v52  ;;  %vm2026_vm2 = vcmp.eq.f32.partialorder %v953_v59, 8.507059e+37  ;;  %v1055_v38 = vadd.f32 0.001143296, %v1054_v39 }
  0x9a   : > { %v1018_v21 = vmul.f32 %v1017_v3, %v1938_v37  ;;  %v837_v51 = vsel %vm1953_vm6, %v1941_v27, %v832_v54  ;;  %v872_v32 = vsel %vm1998_vm14, %v1911_v20, %v868_v36  ;;  %v956_v23 = vor.u32 1.1754944e-38, %v955_v60 }
  0x9b   : > { %1313 = vrcp.f32 %v983_v22  ;;  %v912_v43 = vsel %vm2007_vm15, %v1935_v57, %v908_v16  ;;  %v952_v59 = vsel %vm2022_vm1, %v1959_v29, %v948_v8  ;;  %v971_v45 = vmul.f32 %v970_v33, %v1873_v53 }
  0x9c   : > { %v1008_v46 = vadd.f32 0.05243302, %v1007_v30  ;;  %v1019_v2 = vadd.f32 0.112945676, %v1018_v21  ;;  %v1045_v27 = vmul.f32 %v1044_v4, %v1984_v35  ;;  %v1056_v48 = vmul.f32 %v1055_v38, %v1984_v35 }
  0x9d   : > { %v1081_v20 = vmul.f32 %v1901_v15, %v1901_v15  ;;  %v2049_v60 = vmul.f32 %v837_v51, %v1914_v24  ;;  %v877_v57 = vsel %vm1975_vm11, %v1945_v28, %v872_v32  ;;  %v893_v29 = vmul.f32 %v1918_v1, %v1779_v10 }
  0x9e   : > { %v933_v53 = vmul.f32 %v932_v41, %v1786_v18  ;;  %v1020_v40 = vmul.f32 %v1019_v2, %v1938_v37  ;;  %v1046_v7 = vadd.f32 0.0036580483, %v1045_v27  ;;  %v1057_v9 = vadd.f32 0.014752088, %v1056_v48 }
  0x9f   : > { %v2058_v54 = vmin.f32 %v1081_v20, 16.0  ;;  %v917_v36 = vsel %vm2014_vm0, %v916_v49, %v912_v43  ;;  %v957_v24 = vsel %vm2026_vm2, %v956_v23, %v952_v59  ;;  %v972_v6 = vadd.f32 1.1283791, %v971_v45 }
  0xa0   : > { %v1009_v28 = vmul.f32 %v1008_v46, %v1938_v37  ;;  %vm989_vm3 = vweird.f32 %v983_v22  ;;  %v1021_v10 = vadd.f32 0.4994258, %v1020_v40  ;;  %v1058_v18 = vmul.f32 %v1057_v9, %v1984_v35 }
  0xa1   : > { %v1314_v47 = vpop.eup %1313  ;;  %v1083_v1 = vmul.f32 2.1237322e-06, %v2058_v54  ;;  %v993_v19 = vand.u32 2147483647, %v983_v22  ;;  %v1047_v56 = vmul.f32 %v1046_v7, %v1984_v35  ;;  %v1094_v61 = vmul.f32 3.8918573e-05, %v2058_v54 }
  0xa2   : > { %v985_v14 = vmul.f32 %v1314_v47, %v983_v22  ;;  %v995_v16 = vand.u32 2147483648, %v983_v22  ;;  %v1022_v33 = vmul.f32 %v1021_v10, %v1938_v37  ;;  %v1059_v62 = vadd.f32 0.112945676, %v1058_v18 }
  0xa3   : > { %v1084_v52 = vadd.f32 0.00028619796, %v1083_v1  ;;  %vm990_vm4 = vweird.f32 %v1314_v47  ;;  %v1010_v8 = vadd.f32 0.18741608, %v1009_v28  ;;  %v1095_v30 = vadd.f32 0.001143296, %v1094_v61 }
  0xa4   : > { %v986_v13 = vsub.f32 1.0, %v985_v14  ;;  %v878_v3 = vmul.f32 %v877_v57, %v1931_v55  ;;  %v2071_v39 = vadd.f32 1.0, %v1022_v33  ;;  %v1060_v5 = vmul.f32 %v1059_v62, %v1984_v35  ;;  %vm2078_vm5 = vmor %vm989_vm3, %vm990_vm4 }
  0xa5   : > { %v1085_v41 = vmul.f32 %v1084_v52, %v2058_v54  ;;  %v918_v58 = vmul.f32 %v917_v36, %v893_v29  ;;  %v1048_v49 = vadd.f32 0.05243302, %v1047_v56  ;;  %v1096_v63 = vmul.f32 %v1095_v30, %v2058_v54 }
  0xa6   : > { %v987_v4 = vmul.f32 %v1314_v47, %v986_v13  ;;  %v958_v21 = vmul.f32 %v957_v24, %v933_v53  ;;  %v973_v38 = vmul.f32 %v972_v6, %v1837_v0  ;;  %v996_v55 = vor.u32 1.1754944e-38, %v995_v16 }
  0xa7   : > { %1315 = vrcp.f32 %v2071_v39  ;;  %vm994_vm6 = vcmp.eq.f32.partialorder %v993_v19, 8.507059e+37  ;;  %v1011_v23 = vmul.f32 %v1010_v8, %v1938_v37  ;;  %v1061_v43 = vadd.f32 0.4994258, %v1060_v5 }
  0xa8   : > { %v988_v32 = vadd.f32 %v1314_v47, %v987_v4  ;;  %v788_v59 = vmul.f32 0.5, %v1747_v25  ;;  %v1267_v45 = vclamps-f32 %v2049_v60, 1.0  ;;  %v1086_v46 = vadd.f32 0.0036580483, %v1085_v41 }
  0xa9   : > { %v1097_v2 = vadd.f32 0.014752088, %v1096_v63  ;;  %v1268_v0 = vclamps-f32 %v878_v3, 1.0  ;;  %v1049_v27 = vmul.f32 %v1048_v49, %v1984_v35  ;;  %v1062_v48 = vmul.f32 %v1061_v43, %v1984_v35 }
  0xaa   : > { %v992_v22 = vsel %vm2078_vm5, %v1314_v47, %v988_v32  ;;  %v789_v20 = vmul.f32 0.5, %v1826_v12  ;;  %v1269_v57 = vclamps-f32 %v918_v58, 1.0  ;;  %v1270_v53 = vclamps-f32 %v958_v21, 1.0 }
  0xab   : > { %v997_v29 = vsel %vm994_vm6, %v996_v55, %v992_v22  ;;  %v1098_v37 = vmul.f32 %v1097_v2, %v2058_v54  ;;  %v1012_v60 = vadd.f32 1.1283791, %v1011_v23  ;;  %v1063_v40 = vadd.f32 1.0, %v1062_v48 }
  0xac   : > { %v998_v25 = vmul.f32 %v997_v29, %v973_v38  ;;  %vm1029_vm7 = vweird.f32 %v2071_v39  ;;  %v1087_v9 = vmul.f32 %v1086_v46, %v2058_v54  ;;  %v1121_v24 = vadd.f32 1.0, %v1267_v45 }
  0xad   : > { %v1316_v7 = vpop.eup %1315  ;;  %v1099_v36 = vadd.f32 0.112945676, %v1098_v37  ;;  %v1050_v12 = vadd.f32 0.18741608, %v1049_v27  ;;  %v1122_v47 = vadd.f32 1.0, %v1268_v0  ;;  %v1035_v18 = vand.u32 2147483648, %v2071_v39 }
  0xae   : > { %v1271_v6 = vclamps-f32 %v998_v25, 1.0  ;;  %v1025_v28 = vmul.f32 %v1316_v7, %v2071_v39  ;;  %v1033_v10 = vand.u32 2147483647, %v2071_v39  ;;  %1317 = vrcp.f32 %v1063_v40 }
  0xaf   : > { %v1123_v1 = vadd.f32 1.0, %v1269_v57  ;;  %vm1030_vm8 = vweird.f32 %v1316_v7  ;;  %v1100_v19 = vmul.f32 %v1099_v36, %v2058_v54  ;;  %v1124_v56 = vadd.f32 1.0, %v1270_v53 }
  0xb0   : > { %v1026_v14 = vsub.f32 1.0, %v1025_v28  ;;  %v1088_v61 = vadd.f32 0.05243302, %v1087_v9  ;;  %v1125_v16 = vadd.f32 1.0, %v1271_v6  ;;  %v1129_v33 = vmul.f32 %v1121_v24, %v1885_v34  ;;  %vm2110_vm9 = vmor %vm1029_vm7, %vm1030_vm8 }
  0xb1   : > { %v1051_v52 = vmul.f32 %v1050_v12, %v1984_v35  ;;  %v1101_v13 = vadd.f32 0.4994258, %v1100_v19  ;;  %v1130_v8 = vmul.f32 %v1122_v47, %v1893_v31  ;;  %v1036_v3 = vor.u32 1.1754944e-38, %v1035_v18 }
  0xb2   : > { %v1027_v62 = vmul.f32 %v1316_v7, %v1026_v14  ;;  %v1131_v5 = vmul.f32 %v1123_v1, %v1896_v42  ;;  %v1132_v41 = vmul.f32 %v1124_v56, %v788_v59  ;;  %v1133_v58 = vmul.f32 %v1125_v16, %v789_v20  ;;  %1137 = vst [vmem:[%s2102_s30] sm:$0xff] %v1129_v33 }
  0xb3   : > { %v1013_v34 = vmul.f32 %v1012_v60, %v1878_v26  ;;  %vm1034_vm10 = vcmp.eq.f32.partialorder %v1033_v10, 8.507059e+37  ;;  %v1102_v31 = vmul.f32 %v1101_v13, %v2058_v54  ;;  %1138 = vst [vmem:[%s2102_s30 + $0x8] sm:$0xff] %v1130_v8  ;;  %v1089_v4 = vmul.f32 %v1088_v61, %v2058_v54 }
  0xb4   : > { %v1028_v35 = vadd.f32 %v1316_v7, %v1027_v62  ;;  %v1318_v39 = vpop.eup %1317  ;;  %1139 = vst [vmem:[%s2102_s30 + $0x10] sm:$0xff] %v1131_v5  ;;  %v1052_v63 = vadd.f32 1.1283791, %v1051_v52  ;;  %vm1069_vm11 = vweird.f32 %v1063_v40  ;;  %v1075_v38 = vand.u32 2147483648, %v1063_v40 }
  0xb5   : > { %v1065_v42 = vmul.f32 %v1318_v39, %v1063_v40  ;;  %1140 = vst [vmem:[%s2102_s30 + $0x18] sm:$0xff] %v1132_v41  ;;  %v1103_v26 = vadd.f32 1.0, %v1102_v31  ;;  %vm1070_vm12 = vweird.f32 %v1318_v39  ;;  %v1073_v32 = vand.u32 2147483647, %v1063_v40 }
  0xb6   : > { %v1032_v49 = vsel %vm2110_vm9, %v1316_v7, %v1028_v35  ;;  %1141 = vst [vmem:[%s2102_s30 + $0x20] sm:$0xff] %v1133_v58  ;;  %v1090_v23 = vadd.f32 0.18741608, %v1089_v4  ;;  %v790_v43 = vmul.f32 0.5, %v1851_v50  ;;  %vm1071_vm13 = vmor %vm1069_vm11, %vm1070_vm12  ;;  %v1076_v46 = vor.u32 1.1754944e-38, %v1075_v38 }
  0xb7   : > { %v1037_v21 = vsel %vm1034_vm10, %v1036_v3, %v1032_v49  ;;  %v1066_v55 = vsub.f32 1.0, %v1065_v42  ;;  %1319 = vrcp.f32 %v1103_v26  ;;  %v1053_v2 = vmul.f32 %v1052_v63, %v1881_v44 }
  0xb8   : > { %v1038_v51 = vmul.f32 %v1037_v21, %v1013_v34  ;;  %vm1074_vm14 = vcmp.eq.f32.partialorder %v1073_v32, 8.507059e+37  ;;  %v1091_v27 = vmul.f32 %v1090_v23, %v2058_v54  ;;  %v791_v50 = vmul.f32 0.5, %v1857_v11 }
  0xb9   : > { %v1067_v45 = vmul.f32 %v1318_v39, %v1066_v55  ;;  %vm1109_vm15 = vweird.f32 %v1103_v26  ;;  %v1115_v60 = vand.u32 2147483648, %v1103_v26  ;;  %v1113_v7 = vand.u32 2147483647, %v1103_v26 }
  0xba   : > { %v1272_v59 = vclamps-f32 %v1038_v51, 1.0  ;;  %v1092_v25 = vadd.f32 1.1283791, %v1091_v27  ;;  %v792_v10 = vmul.f32 0.5, %v1875_v17 }
  0xbb   : > { %v1068_v0 = vadd.f32 %v1318_v39, %v1067_v45  ;;  %v1116_v36 = vor.u32 1.1754944e-38, %v1115_v60  ;;  %vm1114_vm2 = vcmp.eq.f32.partialorder %v1113_v7, 8.507059e+37 }
  0xbc   : > { %v1126_v22 = vadd.f32 1.0, %v1272_v59  ;;  %v1093_v24 = vmul.f32 %v1092_v25, %v1901_v15 }
  0xbd   : > { %v1072_v48 = vsel %vm1071_vm13, %v1318_v39, %v1068_v0  ;;  %v1320_v57 = vpop.eup %1319 }
  0xbe   : > { %v1134_v20 = vmul.f32 %v1126_v22, %v790_v43  ;;  %v1077_v29 = vsel %vm1074_vm14, %v1076_v46, %v1072_v48  ;;  %v1105_v53 = vmul.f32 %v1320_v57, %v1103_v26  ;;  %vm1110_vm0 = vweird.f32 %v1320_v57 }
  0xbf   : > { %v1078_v37 = vmul.f32 %v1077_v29, %v1053_v2  ;;  %vm1111_vm1 = vmor %vm1109_vm15, %vm1110_vm0 }
  0xc0   : > { %1142 = vst [vmem:[%s2102_s30 + $0x28] sm:$0xff] %v1134_v20  ;;  %v1106_v44 = vsub.f32 1.0, %v1105_v53 }
  0xc1   : > { %v1273_v40 = vclamps-f32 %v1078_v37, 1.0 }
  0xc2   : > { %v1107_v9 = vmul.f32 %v1320_v57, %v1106_v44 }
  0xc3   : > { %v1127_v54 = vadd.f32 1.0, %v1273_v40 }
  0xc4   : > { %v1108_v6 = vadd.f32 %v1320_v57, %v1107_v9 }
  0xc5   : > { %v1135_v28 = vmul.f32 %v1127_v54, %v791_v50 }
  0xc6   : > { %v1112_v12 = vsel %vm1111_vm1, %v1320_v57, %v1108_v6 }
  0xc7   : > { %1143 = vst [vmem:[%s2102_s30 + $0x30] sm:$0xff] %v1135_v28  ;;  %v1117_v11 = vsel %vm1114_vm2, %v1116_v36, %v1112_v12 }
  0xc8   : > { %v1118_v47 = vmul.f32 %v1117_v11, %v1093_v24 }
  0xca   : > { %v1274_v18 = vclamps-f32 %v1118_v47, 1.0 }
  0xcc   : > { %v1128_v1 = vadd.f32 1.0, %v1274_v18 }
  0xce   : > { %v1136_v14 = vmul.f32 %v1128_v1, %v792_v10 }
  0xd0   : > { %1144 = vst [vmem:[%s2102_s30 + $0x38] sm:$0xff] %v1136_v14 }
  0xd1 PF: > { %s13_s14 = sadd.s32 1, %s1343_s14   ;;  %s2198_s12 = smov %s1339_s13 }
  0xd2   : > { %p10_p5 = scmp.ge.s32.totalorder %s13_s14, 4   ;;  %s2199_s13 = smov %s2201_s15 }
  0xd4   :  { %12 = sbr.rel (!%p10_p5) target bundleno = 2 (0x2), region = 68 }

// kernel: mlp_forward.5
= control target key start
LH: loop header
LB: loop body
LE: loop exit
PB: predicated region body
PF: predicated region fallthrough
CT: control target
= control target key end

     0   :  { %vm22_vm0 = vcmask 261120   ;;  %s533_s1 = inlined_call_operand.vmem [shape: f32[128,32], index: 1, kind: input, shape index: {}]   ;;  %s534_s2 = inlined_call_operand.vmem [shape: f32[1,32], index: 2, kind: input, shape index: {}]   ;;  %s535_s3 = inlined_call_operand.vmem [shape: f32[128,32], index: 3, kind: output, shape index: {}]   ;;  %s536_s0 = inlined_call_operand.vmem [shape: f32[128,128], index: 0, kind: input, shape index: {}]  }
   0x1   :  { %v86_v0 = vld [vmem:[%s533_s1 + $0x78] sm:$0xff]  ;;  %v85_v1 = vld [vmem:[%s533_s1 + $0x70] sm:$0xff]  ;;  %v84_v2 = vld [vmem:[%s533_s1 + $0x68] sm:$0xff] }
   0x2   :  { %190 = vmatpush.msra.mxu2 %v86_v0  ;;  %191 = vmatpush.msra.mxu3 %v86_v0  ;;  %v83_v3 = vld [vmem:[%s533_s1 + $0x60] sm:$0xff]  ;;  %v82_v4 = vld [vmem:[%s533_s1 + $0x58] sm:$0xff]  ;;  %v81_v5 = vld [vmem:[%s533_s1 + $0x50] sm:$0xff] }
   0x3   :  { %87 = vmatpush.msra.mxu0 %v86_v0  ;;  %189 = vmatpush.msra.mxu1 %v86_v0  ;;  %v80_v6 = vld [vmem:[%s533_s1 + $0x48] sm:$0xff]  ;;  %v79_v7 = vld [vmem:[%s533_s1 + $0x40] sm:$0xff]  ;;  %v78_v8 = vld [vmem:[%s533_s1 + $0x38] sm:$0xff] }
   0x4   :  { %193 = vmatpush.msra.mxu2 %v85_v1  ;;  %194 = vmatpush.msra.mxu3 %v85_v1  ;;  %v77_v9 = vld [vmem:[%s533_s1 + $0x30] sm:$0xff]  ;;  %v76_v10 = vld [vmem:[%s533_s1 + $0x28] sm:$0xff]  ;;  %v75_v11 = vld [vmem:[%s533_s1 + $0x20] sm:$0xff] }
   0x5   :  { %88 = vmatpush.msra.mxu0 %v85_v1  ;;  %192 = vmatpush.msra.mxu1 %v85_v1  ;;  %v74_v12 = vld [vmem:[%s533_s1 + $0x18] sm:$0xff]  ;;  %v73_v13 = vld [vmem:[%s533_s1 + $0x10] sm:$0xff]  ;;  %v72_v14 = vld [vmem:[%s533_s1 + $0x8] sm:$0xff] }
   0x6   :  { %196 = vmatpush.msra.mxu2 %v84_v2  ;;  %197 = vmatpush.msra.mxu3 %v84_v2  ;;  %v237_v15 = vld [vmem:[%s534_s2] ss:$0 sm:$0xff]  ;;  %v64_v21 = vld [vmem:[%s536_s0 + $0x48] sm:$0xff]  ;;  %v65_v25 = vld [vmem:[%s536_s0 + $0x50] sm:$0xff] }
   0x7   :  { %89 = vmatpush.msra.mxu0 %v84_v2  ;;  %195 = vmatpush.msra.mxu1 %v84_v2  ;;  %v71_v16 = vld [vmem:[%s533_s1] sm:$0xff]  ;;  %23 = vst.msk [vmem:[%s535_s3] sm:$0xff] %vm22_vm0, %v237_v15  ;;  %v68_v22 = vld [vmem:[%s536_s0 + $0x68] sm:$0xff]  ;;  %v69_v26 = vld [vmem:[%s536_s0 + $0x70] sm:$0xff] }
   0x8   :  { %199 = vmatpush.msra.mxu2 %v83_v3  ;;  %200 = vmatpush.msra.mxu3 %v83_v3  ;;  %v63_v17 = vld [vmem:[%s536_s0 + $0x40] sm:$0xff]  ;;  %24 = vst.msk [vmem:[%s535_s3 + $0x8] sm:$0xff] %vm22_vm0, %v237_v15  ;;  %v56_v23 = vld [vmem:[%s536_s0 + $0x8] sm:$0xff]  ;;  %v57_v27 = vld [vmem:[%s536_s0 + $0x10] sm:$0xff] }
   0x9   :  { %90 = vmatpush.msra.mxu0 %v83_v3  ;;  %198 = vmatpush.msra.mxu1 %v83_v3  ;;  %v67_v18 = vld [vmem:[%s536_s0 + $0x60] sm:$0xff]  ;;  %25 = vst.msk [vmem:[%s535_s3 + $0x10] sm:$0xff] %vm22_vm0, %v237_v15  ;;  %v60_v24 = vld [vmem:[%s536_s0 + $0x28] sm:$0xff]  ;;  %v61_v28 = vld [vmem:[%s536_s0 + $0x30] sm:$0xff] }
   0xa   :  { %202 = vmatpush.msra.mxu2 %v82_v4  ;;  %203 = vmatpush.msra.mxu3 %v82_v4  ;;  %v55_v19 = vld [vmem:[%s536_s0] sm:$0xff]  ;;  %26 = vst.msk [vmem:[%s535_s3 + $0x18] sm:$0xff] %vm22_vm0, %v237_v15  ;;  %v66_v29 = vld [vmem:[%s536_s0 + $0x58] sm:$0xff] }
   0xb   :  { %91 = vmatpush.msra.mxu0 %v82_v4  ;;  %201 = vmatpush.msra.mxu1 %v82_v4  ;;  %v59_v20 = vld [vmem:[%s536_s0 + $0x20] sm:$0xff]  ;;  %27 = vst.msk [vmem:[%s535_s3 + $0x20] sm:$0xff] %vm22_vm0, %v237_v15  ;;  %v70_v30 = vld [vmem:[%s536_s0 + $0x78] sm:$0xff] }
   0xc   :  { %205 = vmatpush.msra.mxu2 %v81_v5  ;;  %206 = vmatpush.msra.mxu3 %v81_v5  ;;  %28 = vst.msk [vmem:[%s535_s3 + $0x28] sm:$0xff] %vm22_vm0, %v237_v15  ;;  %v58_v31 = vld [vmem:[%s536_s0 + $0x18] sm:$0xff] }
   0xd   :  { %92 = vmatpush.msra.mxu0 %v81_v5  ;;  %204 = vmatpush.msra.mxu1 %v81_v5  ;;  %29 = vst.msk [vmem:[%s535_s3 + $0x30] sm:$0xff] %vm22_vm0, %v237_v15  ;;  %v62_v32 = vld [vmem:[%s536_s0 + $0x38] sm:$0xff] }
   0xe   :  { %208 = vmatpush.msra.mxu2 %v80_v6  ;;  %209 = vmatpush.msra.mxu3 %v80_v6  ;;  %30 = vst.msk [vmem:[%s535_s3 + $0x38] sm:$0xff] %vm22_vm0, %v237_v15  ;;  %v39_v33 = vld [vmem:[%s535_s3] sm:$0xff] }
   0xf   :  { %93 = vmatpush.msra.mxu0 %v80_v6  ;;  %207 = vmatpush.msra.mxu1 %v80_v6  ;;  %31 = vst.msk [vmem:[%s535_s3 + $0x40] sm:$0xff] %vm22_vm0, %v237_v15  ;;  %v40_v45 = vld [vmem:[%s535_s3 + $0x8] sm:$0xff] }
  0x10   :  { %211 = vmatpush.msra.mxu2 %v79_v7  ;;  %212 = vmatpush.msra.mxu3 %v79_v7  ;;  %32 = vst.msk [vmem:[%s535_s3 + $0x48] sm:$0xff] %vm22_vm0, %v237_v15  ;;  %v41_v57 = vld [vmem:[%s535_s3 + $0x10] sm:$0xff] }
  0x11   :  { %94 = vmatpush.msra.mxu0 %v79_v7  ;;  %210 = vmatpush.msra.mxu1 %v79_v7  ;;  %33 = vst.msk [vmem:[%s535_s3 + $0x50] sm:$0xff] %vm22_vm0, %v237_v15  ;;  %v42_v5 = vld [vmem:[%s535_s3 + $0x18] sm:$0xff] }
  0x12   :  { %214 = vmatpush.msra.mxu2 %v78_v8  ;;  %215 = vmatpush.msra.mxu3 %v78_v8  ;;  %34 = vst.msk [vmem:[%s535_s3 + $0x58] sm:$0xff] %vm22_vm0, %v237_v15  ;;  %v43_v34 = vld [vmem:[%s535_s3 + $0x20] sm:$0xff] }
  0x13   :  { %95 = vmatpush.msra.mxu0 %v78_v8  ;;  %213 = vmatpush.msra.mxu1 %v78_v8  ;;  %35 = vst.msk [vmem:[%s535_s3 + $0x60] sm:$0xff] %vm22_vm0, %v237_v15  ;;  %v44_v46 = vld [vmem:[%s535_s3 + $0x28] sm:$0xff] }
  0x14   :  { %217 = vmatpush.msra.mxu2 %v77_v9  ;;  %218 = vmatpush.msra.mxu3 %v77_v9  ;;  %36 = vst.msk [vmem:[%s535_s3 + $0x68] sm:$0xff] %vm22_vm0, %v237_v15  ;;  %v45_v58 = vld [vmem:[%s535_s3 + $0x30] sm:$0xff] }
  0x15   :  { %96 = vmatpush.msra.mxu0 %v77_v9  ;;  %216 = vmatpush.msra.mxu1 %v77_v9  ;;  %37 = vst.msk [vmem:[%s535_s3 + $0x70] sm:$0xff] %vm22_vm0, %v237_v15  ;;  %v46_v6 = vld [vmem:[%s535_s3 + $0x38] sm:$0xff] }
  0x16   :  { %220 = vmatpush.msra.mxu2 %v76_v10  ;;  %221 = vmatpush.msra.mxu3 %v76_v10  ;;  %38 = vst.msk [vmem:[%s535_s3 + $0x78] sm:$0xff] %vm22_vm0, %v237_v15  ;;  %v47_v39 = vld [vmem:[%s535_s3 + $0x40] sm:$0xff] }
  0x17   :  { %97 = vmatpush.msra.mxu0 %v76_v10  ;;  %219 = vmatpush.msra.mxu1 %v76_v10  ;;  %v48_v51 = vld [vmem:[%s535_s3 + $0x48] sm:$0xff] }
  0x18   :  { %223 = vmatpush.msra.mxu2 %v75_v11  ;;  %224 = vmatpush.msra.mxu3 %v75_v11  ;;  %v49_v63 = vld [vmem:[%s535_s3 + $0x50] sm:$0xff] }
  0x19   :  { %98 = vmatpush.msra.mxu0 %v75_v11  ;;  %222 = vmatpush.msra.mxu1 %v75_v11  ;;  %v50_v11 = vld [vmem:[%s535_s3 + $0x58] sm:$0xff] }
  0x1a   :  { %226 = vmatpush.msra.mxu2 %v74_v12  ;;  %227 = vmatpush.msra.mxu3 %v74_v12  ;;  %v51_v40 = vld [vmem:[%s535_s3 + $0x60] sm:$0xff] }
  0x1b   :  { %99 = vmatpush.msra.mxu0 %v74_v12  ;;  %225 = vmatpush.msra.mxu1 %v74_v12  ;;  %v52_v52 = vld [vmem:[%s535_s3 + $0x68] sm:$0xff] }
  0x1c   :  { %229 = vmatpush.msra.mxu2 %v73_v13  ;;  %230 = vmatpush.msra.mxu3 %v73_v13  ;;  %v53_v0 = vld [vmem:[%s535_s3 + $0x70] sm:$0xff] }
  0x1d   :  { %100 = vmatpush.msra.mxu0 %v73_v13  ;;  %228 = vmatpush.msra.mxu1 %v73_v13  ;;  %v54_v12 = vld [vmem:[%s535_s3 + $0x78] sm:$0xff] }
  0x1e   :  { %232 = vmatpush.msra.mxu2 %v72_v14  ;;  %233 = vmatpush.msra.mxu3 %v72_v14 }
  0x1f   :  { %101 = vmatpush.msra.mxu0 %v72_v14  ;;  %231 = vmatpush.msra.mxu1 %v72_v14 }
  0x20   :  { %235 = vmatpush.msra.mxu2 %v71_v16  ;;  %236 = vmatpush.msra.mxu3 %v71_v16 }
  0x21   :  { %127 = vmatmul.f32.vlgmr.msra.gmra.mxu2 %v63_v17  ;;  %139 = vmatmul.f32.vlgmr.msra.gmra.mxu3 %v67_v18 }
  0x22   :  { %102 = vmatpush.msra.mxu0 %v71_v16  ;;  %234 = vmatpush.msra.mxu1 %v71_v16 }
  0x23   :  { %103 = vmatmul.f32.vlgmr.msra.gmra.mxu0 %v55_v19  ;;  %115 = vmatmul.f32.vlgmr.msra.gmra.mxu1 %v59_v20 }
  0x29   :  { %130 = vmatmul.f32.gmra.mxu2 %v64_v21  ;;  %142 = vmatmul.f32.gmra.mxu3 %v68_v22 }
  0x2b   :  { %106 = vmatmul.f32.gmra.mxu0 %v56_v23  ;;  %118 = vmatmul.f32.gmra.mxu1 %v60_v24 }
  0x31   :  { %133 = vmatmul.f32.gmra.mxu2 %v65_v25  ;;  %145 = vmatmul.f32.gmra.mxu3 %v69_v26 }
  0x33   :  { %109 = vmatmul.f32.gmra.mxu0 %v57_v27  ;;  %121 = vmatmul.f32.gmra.mxu1 %v61_v28 }
  0x39   :  { %136 = vmatmul.f32.gmra.mxu2 %v66_v29  ;;  %148 = vmatmul.f32.gmra.mxu3 %v70_v30 }
  0x3b   :  { %112 = vmatmul.f32.gmra.mxu0 %v58_v31  ;;  %124 = vmatmul.f32.gmra.mxu1 %v62_v32 }
  0xa0   :  { %v104_v35 = vpop.f32.mrf.mxu0  ;;  %v116_v36 = vpop.f32.mrf.mxu1 }
  0xa1   :  { %v152_v37 = vadd.f32 %v104_v35, %v39_v33  ;;  %v156_v38 = vadd.f32 %v116_v36, %v43_v34 }
  0xa3   :  { %169 = vst.msk [vmem:[%s535_s3] sm:$0xff] %vm22_vm0, %v152_v37 }
  0xa4   :  { %173 = vst.msk [vmem:[%s535_s3 + $0x20] sm:$0xff] %vm22_vm0, %v156_v38  ;;  %v128_v41 = vpop.f32.mrf.mxu2  ;;  %v140_v42 = vpop.f32.mrf.mxu3 }
  0xa5   :  { %v160_v43 = vadd.f32 %v128_v41, %v47_v39  ;;  %v164_v44 = vadd.f32 %v140_v42, %v51_v40 }
  0xa7   :  { %177 = vst.msk [vmem:[%s535_s3 + $0x40] sm:$0xff] %vm22_vm0, %v160_v43 }
  0xa8   :  { %181 = vst.msk [vmem:[%s535_s3 + $0x60] sm:$0xff] %vm22_vm0, %v164_v44  ;;  %v107_v47 = vpop.f32.mrf.mxu0  ;;  %v119_v48 = vpop.f32.mrf.mxu1 }
  0xa9   :  { %v153_v49 = vadd.f32 %v107_v47, %v40_v45  ;;  %v157_v50 = vadd.f32 %v119_v48, %v44_v46 }
  0xab   :  { %170 = vst.msk [vmem:[%s535_s3 + $0x8] sm:$0xff] %vm22_vm0, %v153_v49 }
  0xac   :  { %174 = vst.msk [vmem:[%s535_s3 + $0x28] sm:$0xff] %vm22_vm0, %v157_v50  ;;  %v131_v53 = vpop.f32.mrf.mxu2  ;;  %v143_v54 = vpop.f32.mrf.mxu3 }
  0xad   :  { %v161_v55 = vadd.f32 %v131_v53, %v48_v51  ;;  %v165_v56 = vadd.f32 %v143_v54, %v52_v52 }
  0xaf   :  { %178 = vst.msk [vmem:[%s535_s3 + $0x48] sm:$0xff] %vm22_vm0, %v161_v55 }
  0xb0   :  { %182 = vst.msk [vmem:[%s535_s3 + $0x68] sm:$0xff] %vm22_vm0, %v165_v56  ;;  %v110_v59 = vpop.f32.mrf.mxu0  ;;  %v122_v60 = vpop.f32.mrf.mxu1 }
  0xb1   :  { %v154_v61 = vadd.f32 %v110_v59, %v41_v57  ;;  %v158_v62 = vadd.f32 %v122_v60, %v45_v58 }
  0xb3   :  { %171 = vst.msk [vmem:[%s535_s3 + $0x10] sm:$0xff] %vm22_vm0, %v154_v61 }
  0xb4   :  { %175 = vst.msk [vmem:[%s535_s3 + $0x30] sm:$0xff] %vm22_vm0, %v158_v62  ;;  %v134_v1 = vpop.f32.mrf.mxu2  ;;  %v146_v2 = vpop.f32.mrf.mxu3 }
  0xb5   :  { %v162_v3 = vadd.f32 %v134_v1, %v49_v63  ;;  %v166_v4 = vadd.f32 %v146_v2, %v53_v0 }
  0xb7   :  { %179 = vst.msk [vmem:[%s535_s3 + $0x50] sm:$0xff] %vm22_vm0, %v162_v3 }
  0xb8   :  { %183 = vst.msk [vmem:[%s535_s3 + $0x70] sm:$0xff] %vm22_vm0, %v166_v4  ;;  %v113_v7 = vpop.f32.mrf.mxu0  ;;  %v125_v8 = vpop.f32.mrf.mxu1 }
  0xb9   :  { %v155_v9 = vadd.f32 %v113_v7, %v42_v5  ;;  %v159_v10 = vadd.f32 %v125_v8, %v46_v6 }
  0xbb   :  { %172 = vst.msk [vmem:[%s535_s3 + $0x18] sm:$0xff] %vm22_vm0, %v155_v9 }
  0xbc   :  { %176 = vst.msk [vmem:[%s535_s3 + $0x38] sm:$0xff] %vm22_vm0, %v159_v10  ;;  %v137_v13 = vpop.f32.mrf.mxu2  ;;  %v149_v14 = vpop.f32.mrf.mxu3 }
  0xbd   :  { %v163_v15 = vadd.f32 %v137_v13, %v50_v11  ;;  %v167_v16 = vadd.f32 %v149_v14, %v54_v12 }
  0xbf   :  { %180 = vst.msk [vmem:[%s535_s3 + $0x58] sm:$0xff] %vm22_vm0, %v163_v15 }
  0xc0   :  { %184 = vst.msk [vmem:[%s535_s3 + $0x78] sm:$0xff] %vm22_vm0, %v167_v16 }

// kernel: mlp_forward.3
= control target key start
LH: loop header
LB: loop body
LE: loop exit
PB: predicated region body
PF: predicated region fallthrough
CT: control target
= control target key end

     0   :  { %vm74_vm0 = vcmask 261120   ;;  %s400_s1 = inlined_call_operand.vmem [shape: f32[32,128], index: 1, kind: input, shape index: {}]   ;;  %s401_s0 = inlined_call_operand.vmem [shape: f32[128,32], index: 0, kind: input, shape index: {}]   ;;  %s402_s2 = inlined_call_operand.vmem [shape: f32[1,128], index: 2, kind: input, shape index: {}]   ;;  %s403_s3 = inlined_call_operand.vmem [shape: f32[128,128], index: 3, kind: output, shape index: {}]  }
   0x1   :  { %v73_v0 = vld [vmem:[%s400_s1 + $0x18] sm:$0xff]  ;;  %v72_v1 = vld [vmem:[%s400_s1 + $0x10] sm:$0xff]  ;;  %v71_v2 = vld [vmem:[%s400_s1 + $0x8] sm:$0xff] }
   0x2   :  { %241 = vmatpush.msra.mxu2 %v73_v0  ;;  %242 = vmatpush.msra.mxu3 %v73_v0  ;;  %v70_v3 = vld [vmem:[%s400_s1] sm:$0xff]  ;;  %v63_v8 = vld [vmem:[%s401_s0 + $0x48] sm:$0xff]  ;;  %v64_v12 = vld [vmem:[%s401_s0 + $0x50] sm:$0xff] }
   0x3   :  { %135 = vmatpush.msra.mxu0 %v73_v0  ;;  %240 = vmatpush.msra.mxu1 %v73_v0  ;;  %v62_v4 = vld [vmem:[%s401_s0 + $0x40] sm:$0xff]  ;;  %v67_v9 = vld [vmem:[%s401_s0 + $0x68] sm:$0xff]  ;;  %v68_v13 = vld [vmem:[%s401_s0 + $0x70] sm:$0xff] }
   0x4   :  { %244 = vmatpush.msra.mxu2 %v72_v1  ;;  %245 = vmatpush.msra.mxu3 %v72_v1  ;;  %v66_v5 = vld [vmem:[%s401_s0 + $0x60] sm:$0xff]  ;;  %v55_v10 = vld [vmem:[%s401_s0 + $0x8] sm:$0xff]  ;;  %v56_v14 = vld [vmem:[%s401_s0 + $0x10] sm:$0xff] }
   0x5   :  { %136 = vmatpush.msra.mxu0 %v72_v1  ;;  %243 = vmatpush.msra.mxu1 %v72_v1  ;;  %v54_v6 = vld [vmem:[%s401_s0] sm:$0xff]  ;;  %v59_v11 = vld [vmem:[%s401_s0 + $0x28] sm:$0xff]  ;;  %v60_v15 = vld [vmem:[%s401_s0 + $0x30] sm:$0xff] }
   0x6   :  { %247 = vmatpush.msra.mxu2 %v71_v2  ;;  %248 = vmatpush.msra.mxu3 %v71_v2  ;;  %v58_v7 = vld [vmem:[%s401_s0 + $0x20] sm:$0xff]  ;;  %v65_v16 = vld [vmem:[%s401_s0 + $0x58] sm:$0xff] }
   0x7   :  { %137 = vmatpush.msra.mxu0 %v71_v2  ;;  %246 = vmatpush.msra.mxu1 %v71_v2  ;;  %v69_v17 = vld [vmem:[%s401_s0 + $0x78] sm:$0xff]  ;;  %v252_v20 = vld [vmem:[%s402_s2] ss:$0 sm:$0xff] }
   0x8   :  { %250 = vmatpush.msra.mxu2 %v70_v3  ;;  %251 = vmatpush.msra.mxu3 %v70_v3  ;;  %v57_v18 = vld [vmem:[%s401_s0 + $0x18] sm:$0xff] }
   0x9   :  { %232 = vmatmul.msk.f32.vlgmr.msra.gmra.mxu2 %vm74_vm0, %v62_v4  ;;  %236 = vmatmul.msk.f32.vlgmr.msra.gmra.mxu3 %vm74_vm0, %v66_v5  ;;  %v61_v19 = vld [vmem:[%s401_s0 + $0x38] sm:$0xff] }
   0xa   :  { %138 = vmatpush.msra.mxu0 %v70_v3  ;;  %249 = vmatpush.msra.mxu1 %v70_v3 }
   0xb   :  { %224 = vmatmul.msk.f32.vlgmr.msra.gmra.mxu0 %vm74_vm0, %v54_v6  ;;  %228 = vmatmul.msk.f32.vlgmr.msra.gmra.mxu1 %vm74_vm0, %v58_v7 }
  0x11   :  { %233 = vmatmul.msk.f32.gmra.mxu2 %vm74_vm0, %v63_v8  ;;  %237 = vmatmul.msk.f32.gmra.mxu3 %vm74_vm0, %v67_v9 }
  0x13   :  { %225 = vmatmul.msk.f32.gmra.mxu0 %vm74_vm0, %v55_v10  ;;  %229 = vmatmul.msk.f32.gmra.mxu1 %vm74_vm0, %v59_v11 }
  0x19   :  { %234 = vmatmul.msk.f32.gmra.mxu2 %vm74_vm0, %v64_v12  ;;  %238 = vmatmul.msk.f32.gmra.mxu3 %vm74_vm0, %v68_v13 }
  0x1b   :  { %226 = vmatmul.msk.f32.gmra.mxu0 %vm74_vm0, %v56_v14  ;;  %230 = vmatmul.msk.f32.gmra.mxu1 %vm74_vm0, %v60_v15 }
  0x21   :  { %235 = vmatmul.msk.f32.gmra.mxu2 %vm74_vm0, %v65_v16  ;;  %239 = vmatmul.msk.f32.gmra.mxu3 %vm74_vm0, %v69_v17 }
  0x23   :  { %227 = vmatmul.msk.f32.gmra.mxu0 %vm74_vm0, %v57_v18  ;;  %231 = vmatmul.msk.f32.gmra.mxu1 %vm74_vm0, %v61_v19 }
  0x88   :  { %v140_v21 = vpop.f32.mrf.mxu0  ;;  %v152_v22 = vpop.f32.mrf.mxu1 }
  0x89   :  { %v188_v23 = vadd.f32 %v252_v20, %v140_v21  ;;  %v192_v24 = vadd.f32 %v252_v20, %v152_v22 }
  0x8b   :  { %204 = vst [vmem:[%s403_s3] sm:$0xff] %v188_v23 }
  0x8c   :  { %208 = vst [vmem:[%s403_s3 + $0x20] sm:$0xff] %v192_v24  ;;  %v164_v25 = vpop.f32.mrf.mxu2  ;;  %v176_v26 = vpop.f32.mrf.mxu3 }
  0x8d   :  { %v196_v27 = vadd.f32 %v252_v20, %v164_v25  ;;  %v200_v28 = vadd.f32 %v252_v20, %v176_v26 }
  0x8f   :  { %212 = vst [vmem:[%s403_s3 + $0x40] sm:$0xff] %v196_v27 }
  0x90   :  { %216 = vst [vmem:[%s403_s3 + $0x60] sm:$0xff] %v200_v28  ;;  %v143_v29 = vpop.f32.mrf.mxu0  ;;  %v155_v30 = vpop.f32.mrf.mxu1 }
  0x91   :  { %v189_v31 = vadd.f32 %v252_v20, %v143_v29  ;;  %v193_v32 = vadd.f32 %v252_v20, %v155_v30 }
  0x93   :  { %205 = vst [vmem:[%s403_s3 + $0x8] sm:$0xff] %v189_v31 }
  0x94   :  { %209 = vst [vmem:[%s403_s3 + $0x28] sm:$0xff] %v193_v32  ;;  %v167_v33 = vpop.f32.mrf.mxu2  ;;  %v179_v34 = vpop.f32.mrf.mxu3 }
  0x95   :  { %v197_v35 = vadd.f32 %v252_v20, %v167_v33  ;;  %v201_v36 = vadd.f32 %v252_v20, %v179_v34 }
  0x97   :  { %213 = vst [vmem:[%s403_s3 + $0x48] sm:$0xff] %v197_v35 }
  0x98   :  { %217 = vst [vmem:[%s403_s3 + $0x68] sm:$0xff] %v201_v36  ;;  %v146_v37 = vpop.f32.mrf.mxu0  ;;  %v158_v38 = vpop.f32.mrf.mxu1 }
  0x99   :  { %v190_v39 = vadd.f32 %v252_v20, %v146_v37  ;;  %v194_v40 = vadd.f32 %v252_v20, %v158_v38 }
  0x9b   :  { %206 = vst [vmem:[%s403_s3 + $0x10] sm:$0xff] %v190_v39 }
  0x9c   :  { %210 = vst [vmem:[%s403_s3 + $0x30] sm:$0xff] %v194_v40  ;;  %v170_v41 = vpop.f32.mrf.mxu2  ;;  %v182_v42 = vpop.f32.mrf.mxu3 }
  0x9d   :  { %v198_v43 = vadd.f32 %v252_v20, %v170_v41  ;;  %v202_v44 = vadd.f32 %v252_v20, %v182_v42 }
  0x9f   :  { %214 = vst [vmem:[%s403_s3 + $0x50] sm:$0xff] %v198_v43 }
  0xa0   :  { %218 = vst [vmem:[%s403_s3 + $0x70] sm:$0xff] %v202_v44  ;;  %v149_v45 = vpop.f32.mrf.mxu0  ;;  %v161_v46 = vpop.f32.mrf.mxu1 }
  0xa1   :  { %v191_v47 = vadd.f32 %v252_v20, %v149_v45  ;;  %v195_v48 = vadd.f32 %v252_v20, %v161_v46 }
  0xa3   :  { %207 = vst [vmem:[%s403_s3 + $0x18] sm:$0xff] %v191_v47 }
  0xa4   :  { %211 = vst [vmem:[%s403_s3 + $0x38] sm:$0xff] %v195_v48  ;;  %v173_v49 = vpop.f32.mrf.mxu2  ;;  %v185_v50 = vpop.f32.mrf.mxu3 }
  0xa5   :  { %v199_v51 = vadd.f32 %v252_v20, %v173_v49  ;;  %v203_v52 = vadd.f32 %v252_v20, %v185_v50 }
  0xa7   :  { %215 = vst [vmem:[%s403_s3 + $0x58] sm:$0xff] %v199_v51 }
  0xa8   :  { %219 = vst [vmem:[%s403_s3 + $0x78] sm:$0xff] %v203_v52 }

</bundles_post_ra>
